<compile_context>
chip_gen: v6e
topology: v6e:2x2x1
jax: 0.10.0
libtpu: 0.0.40
codegen_flags: <defaults>
</compile_context>

<pallas_src>
import math
from functools import partial

import jax
import jax.numpy as jnp
from jax.experimental import pallas as pl
from jax.experimental.pallas import tpu as pltpu

MATMUL_DTYPE = jnp.bfloat16            # MXU-rate matmuls; accumulation stays f32
_MASK_VALUE = -1e30                    # finite "masked" value (avoids -inf NaN hazard)

_VMEM_LIMIT_CACHE = None


def _vmem_limit_bytes():
    """Generation-gated VMEM limit: 75% of physical VMEM, capped at 100 MiB."""
    global _VMEM_LIMIT_CACHE
    if _VMEM_LIMIT_CACHE is None:
        try:
            cap = pltpu.get_tpu_info().vmem_capacity_bytes
        except Exception:
            cap = 64 * 1024 * 1024      # assume the smallest generation (v7x)
        _VMEM_LIMIT_CACHE = int(max(32 << 20, min(int(cap * 0.75), 100 << 20)))
    return _VMEM_LIMIT_CACHE


def _cp(semantics):
    return pltpu.CompilerParams(dimension_semantics=semantics,
                                vmem_limit_bytes=_vmem_limit_bytes())


# ----------------------------------------------------------------------------
# In-kernel helpers (2-D ops only: static lane/sublane slices, no reshapes)
# ----------------------------------------------------------------------------

def _mm(a, b):
    """2-D matmul on the MXU, bf16 operands, f32 accumulation."""
    return jnp.dot(a.astype(MATMUL_DTYPE), b.astype(MATMUL_DTYPE),
                   preferred_element_type=jnp.float32)


def _mm_nt(a, b):
    """a @ b.T (contract last dims of both) without materializing a transpose."""
    return jax.lax.dot_general(a.astype(MATMUL_DTYPE), b.astype(MATMUL_DTYPE),
                               (((1,), (1,)), ((), ())),
                               preferred_element_type=jnp.float32)


def _mha_causal(q, k, v, wo, n_heads, scale, q_offset):
    """Multi-head causal attention for one query tile.
    q:(tq,D) f32, k/v:(Sk,D) bf16, wo:(D,D) bf16.  Per-head live state is only
    the (tq,Sk) score tile; head contexts are concatenated along lanes and a
    SINGLE full-K (tq,D)@(D,D) out-projection is done after the head loop."""
    Tq, D = q.shape
    Sk = k.shape[0]
    Dh = D // n_heads
    row = jax.lax.broadcasted_iota(jnp.int32, (Tq, Sk), 0) + q_offset
    col = jax.lax.broadcasted_iota(jnp.int32, (Tq, Sk), 1)
    causal = row >= col
    ctxs = []
    for h in range(n_heads):                              # static unroll, 2-D ops only
        sl = slice(h * Dh, (h + 1) * Dh)
        s = _mm_nt(q[:, sl], k[:, sl]) * scale            # (tq, Sk) f32
        s = jnp.where(causal, s, _MASK_VALUE)
        m = jnp.max(s, axis=-1, keepdims=True)
        p = jnp.exp(s - m)
        l = jnp.sum(p, axis=-1, keepdims=True)
        # normalize AFTER the PV matmul; reciprocal lands in the otherwise-idle EUP
        ctx = _mm(p, v[:, sl]) * pl.reciprocal(l, approx=True)   # (tq, Dh) f32
        ctxs.append(ctx)
    ctx = ctxs[0] if n_heads == 1 else jnp.concatenate(ctxs, axis=-1)   # (tq, D)
    return _mm(ctx, wo)                                   # one full-K out-projection


def _add_layernorm(y, x, g, b, eps):
    """Post-norm: LayerNorm(x + y) with f32 statistics (eps matches PyTorch 1e-5)."""
    z = x + y
    mean = jnp.mean(z, axis=-1, keepdims=True)
    var = jnp.mean((z - mean) ** 2, axis=-1, keepdims=True)
    return (z - mean) * jax.lax.rsqrt(var + eps) * g + b


# ----------------------------------------------------------------------------
# Pallas kernels (one per decoder sub-block, plus a tiled linear)
# ----------------------------------------------------------------------------

def _self_attn_block_kernel(x_full_ref, x_tile_ref, wqkv_ref, bqkv_ref,
                            wo_ref, bo_ref, g_ref, b_ref, o_ref, kv_ref,
                            *, n_heads, scale, eps):
    tq, D = x_tile_ref.shape
    qt = pl.program_id(1)
    w_qkv = wqkv_ref[...]                                 # (D, 3D) bf16
    b_qkv = bqkv_ref[...]                                 # (1, 3D) f32

    # K/V projection once per batch row (q-tile 0); persists in VMEM scratch.
    @pl.when(qt == 0)
    def _():
        kv = _mm(x_full_ref[...], w_qkv[:, D:]) + b_qkv[:, D:]     # (S, 2D) f32
        kv_ref[...] = kv.astype(kv_ref.dtype)

    x = x_tile_ref[...]                                   # (tq, D) f32
    q = _mm(x, w_qkv[:, :D]) + b_qkv[:, :D]               # (tq, D) f32
    kv = kv_ref[...]                                      # (S, 2D) bf16
    attn = _mha_causal(q, kv[:, :D], kv[:, D:], wo_ref[...], n_heads, scale,
                       q_offset=qt * tq) + bo_ref[...]
    o_ref[...] = _add_layernorm(attn, x, g_ref[...], b_ref[...], eps).astype(o_ref.dtype)


def _cross_attn_block_kernel(x_tile_ref, mem_ref, wq_ref, bq_ref, wkv_ref, bkv_ref,
                             wo_ref, bo_ref, g_ref, b_ref, o_ref, kv_ref,
                             *, n_heads, scale, eps):
    tq, D = x_tile_ref.shape
    qt = pl.program_id(1)

    # Memory K/V projection once per batch row; reused by every query tile.
    @pl.when(qt == 0)
    def _():
        kv = _mm(mem_ref[...], wkv_ref[...]) + bkv_ref[...]        # (Sk, 2D) f32
        kv_ref[...] = kv.astype(kv_ref.dtype)

    x = x_tile_ref[...]
    q = _mm(x, wq_ref[...]) + bq_ref[...]
    kv = kv_ref[...]
    attn = _mha_causal(q, kv[:, :D], kv[:, D:], wo_ref[...], n_heads, scale,
                       q_offset=qt * tq) + bo_ref[...]
    o_ref[...] = _add_layernorm(attn, x, g_ref[...], b_ref[...], eps).astype(o_ref.dtype)


def _ffn_block_kernel(x_ref, w1_ref, b1_ref, w2_ref, b2_ref, g_ref, b_ref, o_ref, *, eps):
    x = x_ref[...]                                        # (tm, D) f32
    h = jnp.maximum(_mm(x, w1_ref[...]) + b1_ref[...], 0.0)
    y = _mm(h, w2_ref[...]) + b2_ref[...]
    o_ref[...] = _add_layernorm(y, x, g_ref[...], b_ref[...], eps).astype(o_ref.dtype)


def _linear_kernel(x_ref, w_ref, b_ref, o_ref, acc_ref):
    """Tiled matmul + bias; K reduction over the last ("arbitrary") grid axis."""
    @pl.when(pl.program_id(2) == 0)
    def _():
        acc_ref[...] = jnp.zeros_like(acc_ref)
    acc_ref[...] += _mm(x_ref[...], w_ref[...])

    @pl.when(pl.program_id(2) == pl.num_programs(2) - 1)
    def _():
        o_ref[...] = (acc_ref[...] + b_ref[...]).astype(o_ref.dtype)


# ----------------------------------------------------------------------------
# Wrappers (grids / BlockSpecs / tile picking)
# ----------------------------------------------------------------------------

def _div_tile(M, cap):
    """Largest multiple-of-8 divisor of M not exceeding cap.  When M <= cap the
    full dimension is used (no forced split: splitting a block that already fits
    only adds ~0.35us/step on single-TC chips)."""
    if M <= cap:
        return M
    t = (cap // 8) * 8
    while t >= 8:
        if M % t == 0:
            return t
        t -= 8
    return M


def _col_tile(N):
    """Lane-dim tile: multiple of 128 when possible, else the full dimension."""
    for t in (512, 256, 128):
        if N % t == 0:
            return t
    return N


def _round_up(n, m):
    return (n + m - 1) // m * m


def self_attn_block(x, p, ln_g, ln_b, n_heads, eps=1e-5):
    """Fused QKV + causal MHA + out-proj + residual + LayerNorm.
    Grid (B, S//tq): batch parallel, query tiles sequential (KV scratch reuse)."""
    B, S, D = x.shape
    scale = 1.0 / math.sqrt(D // n_heads)
    tq = _div_tile(S, 256)
    const = lambda *shape: pl.BlockSpec(shape, lambda bb, qq: (0,) * len(shape))
    return pl.pallas_call(
        partial(_self_attn_block_kernel, n_heads=n_heads, scale=scale, eps=eps),
        out_shape=jax.ShapeDtypeStruct((B, S, D), jnp.float32),
        grid=(B, S // tq),
        in_specs=[
            pl.BlockSpec((None, S, D), lambda bb, qq: (bb, 0, 0)),    # full x (K/V src)
            pl.BlockSpec((None, tq, D), lambda bb, qq: (bb, qq, 0)),  # query tile
            const(D, 3 * D), const(1, 3 * D),
            const(D, D), const(1, D),
            const(1, D), const(1, D),
        ],
        out_specs=pl.BlockSpec((None, tq, D), lambda bb, qq: (bb, qq, 0)),
        scratch_shapes=[pltpu.VMEM((S, 2 * D), MATMUL_DTYPE)],
        compiler_params=_cp(("parallel", "arbitrary")),
    )(x, x, p["wqkv"], p["bqkv"].reshape(1, 3 * D), p["wo"], p["bo"].reshape(1, D),
      ln_g.reshape(1, D), ln_b.reshape(1, D))


def cross_attn_block(x, memory, p, ln_g, ln_b, n_heads, eps=1e-5):
    """Q proj + fused KV proj (once per batch row) + causal MHA (memory_mask=causal,
    as in the reference forward with memory==tgt) + out-proj + residual + LayerNorm."""
    B, S, D = x.shape
    Sk = memory.shape[1]
    scale = 1.0 / math.sqrt(D // n_heads)
    tq = _div_tile(S, 256)
    const = lambda *shape: pl.BlockSpec(shape, lambda bb, qq: (0,) * len(shape))
    return pl.pallas_call(
        partial(_cross_attn_block_kernel, n_heads=n_heads, scale=scale, eps=eps),
        out_shape=jax.ShapeDtypeStruct((B, S, D), jnp.float32),
        grid=(B, S // tq),
        in_specs=[
            pl.BlockSpec((None, tq, D), lambda bb, qq: (bb, qq, 0)),
            pl.BlockSpec((None, Sk, D), lambda bb, qq: (bb, 0, 0)),
            const(D, D), const(1, D),
            const(D, 2 * D), const(1, 2 * D),
            const(D, D), const(1, D),
            const(1, D), const(1, D),
        ],
        out_specs=pl.BlockSpec((None, tq, D), lambda bb, qq: (bb, qq, 0)),
        scratch_shapes=[pltpu.VMEM((Sk, 2 * D), MATMUL_DTYPE)],
        compiler_params=_cp(("parallel", "arbitrary")),
    )(x, memory, p["wq"], p["bq"].reshape(1, D), p["wkv"], p["bkv"].reshape(1, 2 * D),
      p["wo"], p["bo"].reshape(1, D), ln_g.reshape(1, D), ln_b.reshape(1, D))


def ffn_block(x, w1, b1, w2, b2, ln_g, ln_b, eps=1e-5):
    """Fused W1 + ReLU + W2 + residual + LayerNorm over row tiles of (B*S, D)."""
    M, D = x.shape
    F = w1.shape[1]
    tm = _div_tile(M, 512)
    const = lambda *shape: pl.BlockSpec(shape, lambda i: (0,) * len(shape))
    return pl.pallas_call(
        partial(_ffn_block_kernel, eps=eps),
        out_shape=jax.ShapeDtypeStruct((M, D), jnp.float32),
        grid=(M // tm,),
        in_specs=[
            pl.BlockSpec((tm, D), lambda i: (i, 0)),
            const(D, F), const(1, F),
            const(F, D), const(1, D),
            const(1, D), const(1, D),
        ],
        out_specs=pl.BlockSpec((tm, D), lambda i: (i, 0)),
        compiler_params=_cp(("parallel",)),
    )(x, w1, b1.reshape(1, F), w2, b2.reshape(1, D), ln_g.reshape(1, D), ln_b.reshape(1, D))


def linear(x, w, b):
    """Tiled (M,K)@(K,N)+b vocab projection.  K and N are zero-padded to
    multiples of 128 (unmasked lane-dense stores, full-width MXU contractions);
    the row tile is the full M when it fits so the (K,N) weight is streamed from
    HBM exactly once."""
    M, K = x.shape
    N = w.shape[1]
    Kp, Np = _round_up(K, 128), _round_up(N, 128)
    if Kp != K:
        x = jnp.pad(x, ((0, 0), (0, Kp - K)))
        w = jnp.pad(w, ((0, Kp - K), (0, 0)))
    if Np != N:
        w = jnp.pad(w, ((0, 0), (0, Np - N)))
        b = jnp.pad(b, (0, Np - N))
    tm, tn, tk = _div_tile(M, 1024), _col_tile(Np), _col_tile(Kp)
    out = pl.pallas_call(
        _linear_kernel,
        out_shape=jax.ShapeDtypeStruct((M, Np), jnp.float32),
        grid=(M // tm, Np // tn, Kp // tk),
        in_specs=[
            pl.BlockSpec((tm, tk), lambda i, j, kk: (i, kk)),
            pl.BlockSpec((tk, tn), lambda i, j, kk: (kk, j)),
            pl.BlockSpec((1, tn), lambda i, j, kk: (0, j)),
        ],
        out_specs=pl.BlockSpec((tm, tn), lambda i, j, kk: (i, j)),
        scratch_shapes=[pltpu.VMEM((tm, tn), jnp.float32)],
        compiler_params=_cp(("parallel", "parallel", "arbitrary")),
    )(x, w, b.reshape(1, Np))
    return out if Np == N else out[:, :N]


# ----------------------------------------------------------------------------
# Model glue (embedding, positional encoding, parameters, forward pass)
# ----------------------------------------------------------------------------

def positional_encoding(S, D):
    # Standard sinusoidal PE; PE dropout is an eval-mode no-op.
    pos = jnp.arange(S, dtype=jnp.float32)[:, None]
    div = jnp.exp(jnp.arange(0, D, 2, dtype=jnp.float32) * (-math.log(10000.0) / D))
    pe = jnp.zeros((S, D), dtype=jnp.float32)
    pe = pe.at[:, 0::2].set(jnp.sin(pos * div))
    pe = pe.at[:, 1::2].set(jnp.cos(pos * div))
    return pe


def init_params(key, ntokens, d_model, n_heads, n_layers, ff_dim):
    keys = iter(jax.random.split(key, 4 + n_layers * 16))

    def dense(kin, din, dout):
        # weights stored in MATMUL_DTYPE (bf16) -> half the HBM weight traffic
        w = (0.02 * jax.random.normal(kin, (din, dout), dtype=jnp.float32)).astype(MATMUL_DTYPE)
        b = jnp.zeros((dout,), dtype=jnp.float32)
        return w, b

    params = {
        "emb": 0.02 * jax.random.normal(next(keys), (ntokens, d_model), jnp.float32),
        "layers": [],
    }
    for _ in range(n_layers):
        layer = {}
        # self-attention: Q|K|V fused into one (D, 3D) weight
        wqkv, bqkv = dense(next(keys), d_model, 3 * d_model)
        wo, bo = dense(next(keys), d_model, d_model)
        layer["self_attn"] = dict(wqkv=wqkv, bqkv=bqkv, wo=wo, bo=bo)
        # cross-attention: separate Q (query input), fused K|V (memory input)
        wq, bq = dense(next(keys), d_model, d_model)
        wkv, bkv = dense(next(keys), d_model, 2 * d_model)
        wo2, bo2 = dense(next(keys), d_model, d_model)
        layer["cross_attn"] = dict(wq=wq, bq=bq, wkv=wkv, bkv=bkv, wo=wo2, bo=bo2)
        layer["w1"], layer["b1"] = dense(next(keys), d_model, ff_dim)
        layer["w2"], layer["b2"] = dense(next(keys), ff_dim, d_model)
        for i in (1, 2, 3):
            layer[f"ln{i}_g"] = jnp.ones((d_model,), jnp.float32)
            layer[f"ln{i}_b"] = jnp.zeros((d_model,), jnp.float32)
        params["layers"].append(layer)
    params["out_w"], params["out_b"] = dense(next(keys), d_model, ntokens)
    return params


def harmonia_forward(params, x, n_heads):
    B, S = x.shape
    D = params["emb"].shape[1]
    ntokens = params["out_w"].shape[1]

    tgt = params["emb"][x] + positional_encoding(S, D)[None]   # embedding + PE (glue)
    memory = tgt                                                # decoder memory == tgt

    out = tgt
    for layer in params["layers"]:
        out = self_attn_block(out, layer["self_attn"],
                              layer["ln1_g"], layer["ln1_b"], n_heads)
        out = cross_attn_block(out, memory, layer["cross_attn"],
                               layer["ln2_g"], layer["ln2_b"], n_heads)
        out = ffn_block(out.reshape(B * S, D), layer["w1"], layer["b1"],
                        layer["w2"], layer["b2"],
                        layer["ln3_g"], layer["ln3_b"]).reshape(B, S, D)

    logits = linear(out.reshape(B * S, D), params["out_w"], params["out_b"])
    return logits.reshape(B, S, ntokens)


# ----------------------------------------------------------------------------
# main
# ----------------------------------------------------------------------------

if __name__ == "__main__":
    ntokens, d_model, n_heads, n_layers, ff_dim = 50, 32, 4, 2, 64
    B, S = 2, 8

    root = jax.random.PRNGKey(0)
    kp, kx = jax.random.split(root)
    params = init_params(kp, ntokens, d_model, n_heads, n_layers, ff_dim)
    x = jax.random.randint(kx, (B, S), 0, ntokens, dtype=jnp.int32)

    fwd = jax.jit(partial(harmonia_forward, n_heads=n_heads))
    logits = fwd(params, x)
    jax.block_until_ready(logits)

    assert logits.shape == (B, S, ntokens)
    assert bool(jnp.all(jnp.isfinite(logits)))
    print("KERNEL_OK")
</pallas_src>

<mosaic_0001>
module attributes {stable_mosaic.version = 11 : i64} {
  func.func @_cross_attn_block_kernel(%arg0: i32, %arg1: i32, %arg2: memref<1x8x32xf32, #tpu.memory_space<vmem>>, %arg3: memref<1x8x32xf32, #tpu.memory_space<vmem>>, %arg4: memref<32x32xbf16, #tpu.memory_space<vmem>>, %arg5: memref<1x32xf32, #tpu.memory_space<vmem>>, %arg6: memref<32x64xbf16, #tpu.memory_space<vmem>>, %arg7: memref<1x64xf32, #tpu.memory_space<vmem>>, %arg8: memref<32x32xbf16, #tpu.memory_space<vmem>>, %arg9: memref<1x32xf32, #tpu.memory_space<vmem>>, %arg10: memref<1x32xf32, #tpu.memory_space<vmem>>, %arg11: memref<1x32xf32, #tpu.memory_space<vmem>>, %arg12: memref<1x8x32xf32, #tpu.memory_space<vmem>>, %arg13: memref<8x64xbf16, #tpu.memory_space<vmem>>) attributes {dimension_semantics = [#tpu.dimension_semantics<parallel>, #tpu.dimension_semantics<arbitrary>], iteration_bounds = array<i64: 2, 1>, scalar_prefetch = 0 : i64, scratch_operands = 1 : i64, tpu.core_type = #tpu.core_type<tc>, window_params = [{transform_indices = @transform_0, window_bounds = array<i64: 1, 8, 32>}, {transform_indices = @transform_1, window_bounds = array<i64: 1, 8, 32>}, {pipeline_mode = #tpu.pipeline_mode<synchronous>, transform_indices = @transform_2, window_bounds = array<i64: 32, 32>}, {pipeline_mode = #tpu.pipeline_mode<synchronous>, transform_indices = @transform_3, window_bounds = array<i64: 1, 32>}, {pipeline_mode = #tpu.pipeline_mode<synchronous>, transform_indices = @transform_4, window_bounds = array<i64: 32, 64>}, {pipeline_mode = #tpu.pipeline_mode<synchronous>, transform_indices = @transform_5, window_bounds = array<i64: 1, 64>}, {pipeline_mode = #tpu.pipeline_mode<synchronous>, transform_indices = @transform_6, window_bounds = array<i64: 32, 32>}, {pipeline_mode = #tpu.pipeline_mode<synchronous>, transform_indices = @transform_7, window_bounds = array<i64: 1, 32>}, {pipeline_mode = #tpu.pipeline_mode<synchronous>, transform_indices = @transform_8, window_bounds = array<i64: 1, 32>}, {pipeline_mode = #tpu.pipeline_mode<synchronous>, transform_indices = @transform_9, window_bounds = array<i64: 1, 32>}, {transform_indices = @transform_10, window_bounds = array<i64: 1, 8, 32>}]} {
    %c0_i32 = arith.constant 0 : i32
    %0 = arith.cmpi eq, %arg1, %c0_i32 : i32
    %1 = arith.extui %0 : i1 to i32
    %c0_i32_0 = arith.constant 0 : i32
    %2 = arith.cmpi ne, %1, %c0_i32_0 : i32
    scf.if %2 {
      %c0_50 = arith.constant 0 : index
      %c0_51 = arith.constant 0 : index
      %c0_52 = arith.constant 0 : index
      %139 = vector.load %arg3[%c0_50, %c0_51, %c0_52] : memref<1x8x32xf32, #tpu.memory_space<vmem>>, vector<1x8x32xf32>
      %140 = vector.shape_cast %139 : vector<1x8x32xf32> to vector<8x32xf32>
      %c0_53 = arith.constant 0 : index
      %c0_54 = arith.constant 0 : index
      %141 = vector.load %arg6[%c0_53, %c0_54] : memref<32x64xbf16, #tpu.memory_space<vmem>>, vector<32x64xbf16>
      %142 = arith.truncf %140 : vector<8x32xf32> to vector<8x32xbf16>
      %cst_55 = arith.constant dense<0.000000e+00> : vector<8x64xf32>
      %143 = tpu.matmul %142, %141, %cst_55 {dimension_numbers = #tpu.dot_dimension_numbers<[1], [0], [0], [1], [0, 0, 1, 1], [], []>} : vector<8x32xbf16>, vector<32x64xbf16>, vector<8x64xf32> -> vector<8x64xf32>
      %c0_56 = arith.constant 0 : index
      %c0_57 = arith.constant 0 : index
      %144 = vector.load %arg7[%c0_56, %c0_57] : memref<1x64xf32, #tpu.memory_space<vmem>>, vector<1x64xf32>
      %145 = vector.broadcast %144 : vector<1x64xf32> to vector<8x64xf32>
      %146 = arith.addf %143, %145 : vector<8x64xf32>
      %147 = arith.truncf %146 : vector<8x64xf32> to vector<8x64xbf16>
      %c0_58 = arith.constant 0 : index
      %c0_59 = arith.constant 0 : index
      %148 = vector.load %arg13[%c0_58, %c0_59] : memref<8x64xbf16, #tpu.memory_space<vmem>>, vector<8x64xbf16>
      tpu.vector_store %arg13[%c0_58, %c0_59], %147 {strides = array<i32>} : memref<8x64xbf16, #tpu.memory_space<vmem>>, vector<8x64xbf16>,
    } else {
    }
    %c0 = arith.constant 0 : index
    %c0_1 = arith.constant 0 : index
    %c0_2 = arith.constant 0 : index
    %3 = vector.load %arg2[%c0, %c0_1, %c0_2] : memref<1x8x32xf32, #tpu.memory_space<vmem>>, vector<1x8x32xf32>
    %4 = vector.shape_cast %3 : vector<1x8x32xf32> to vector<8x32xf32>
    %c0_3 = arith.constant 0 : index
    %c0_4 = arith.constant 0 : index
    %5 = vector.load %arg4[%c0_3, %c0_4] : memref<32x32xbf16, #tpu.memory_space<vmem>>, vector<32x32xbf16>
    %6 = arith.truncf %4 : vector<8x32xf32> to vector<8x32xbf16>
    %cst = arith.constant dense<0.000000e+00> : vector<8x32xf32>
    %7 = tpu.matmul %6, %5, %cst {dimension_numbers = #tpu.dot_dimension_numbers<[1], [0], [0], [1], [0, 0, 1, 1], [], []>} : vector<8x32xbf16>, vector<32x32xbf16>, vector<8x32xf32> -> vector<8x32xf32>
    %c0_5 = arith.constant 0 : index
    %c0_6 = arith.constant 0 : index
    %8 = vector.load %arg5[%c0_5, %c0_6] : memref<1x32xf32, #tpu.memory_space<vmem>>, vector<1x32xf32>
    %9 = vector.broadcast %8 : vector<1x32xf32> to vector<8x32xf32>
    %10 = arith.addf %7, %9 : vector<8x32xf32>
    %c0_7 = arith.constant 0 : index
    %c0_8 = arith.constant 0 : index
    %11 = vector.load %arg13[%c0_7, %c0_8] : memref<8x64xbf16, #tpu.memory_space<vmem>>, vector<8x64xbf16>
    %12 = vector.extract_strided_slice %11 {offsets = [0, 0], sizes = [8, 32], strides = [1, 1]} : vector<8x64xbf16> to vector<8x32xbf16>
    %13 = vector.extract_strided_slice %11 {offsets = [0, 32], sizes = [8, 32], strides = [1, 1]} : vector<8x64xbf16> to vector<8x32xbf16>
    %c0_9 = arith.constant 0 : index
    %c0_10 = arith.constant 0 : index
    %14 = vector.load %arg8[%c0_9, %c0_10] : memref<32x32xbf16, #tpu.memory_space<vmem>>, vector<32x32xbf16>
    %c8_i32 = arith.constant 8 : i32
    %15 = arith.muli %arg1, %c8_i32 : i32
    %16 = tpu.iota {dimensions = array<i32: 0>} : vector<8x8xi32>
    %17 = vector.broadcast %15 : i32 to vector<8x8xi32>
    %18 = arith.addi %16, %17 : vector<8x8xi32>
    %19 = tpu.iota {dimensions = array<i32: 1>} : vector<8x8xi32>
    %20 = arith.cmpi sge, %18, %19 : vector<8x8xi32>
    %21 = vector.extract_strided_slice %10 {offsets = [0, 0], sizes = [8, 8], strides = [1, 1]} : vector<8x32xf32> to vector<8x8xf32>
    %22 = vector.extract_strided_slice %12 {offsets = [0, 0], sizes = [8, 8], strides = [1, 1]} : vector<8x32xbf16> to vector<8x8xbf16>
    %23 = arith.truncf %21 : vector<8x8xf32> to vector<8x8xbf16>
    %cst_11 = arith.constant dense<0.000000e+00> : vector<8x8xf32>
    %24 = tpu.matmul %23, %22, %cst_11 {dimension_numbers = #tpu.dot_dimension_numbers<[1], [1], [0], [0], [0, 0, 1, 0], [], []>} : vector<8x8xbf16>, vector<8x8xbf16>, vector<8x8xf32> -> vector<8x8xf32>
    %cst_12 = arith.constant 0.353553385 : f32
    %25 = vector.broadcast %cst_12 : f32 to vector<8x8xf32>
    %26 = arith.mulf %24, %25 : vector<8x8xf32>
    %cst_13 = arith.constant -1.000000e+30 : f32
    %27 = vector.broadcast %cst_13 : f32 to vector<8x8xf32>
    %28 = arith.select %20, %26, %27 : vector<8x8xi1>, vector<8x8xf32>
    %cst_14 = arith.constant dense<0xFF800000> : vector<8xf32>
    %29 = vector.multi_reduction <maximumf>, %28, %cst_14 [1] : vector<8x8xf32> to vector<8xf32>
    %30 = vector.shape_cast %29 : vector<8xf32> to vector<8x1xf32>
    %31 = vector.broadcast %30 : vector<8x1xf32> to vector<8x8xf32>
    %32 = arith.subf %28, %31 : vector<8x8xf32>
    %33 = math.exp %32 : vector<8x8xf32>
    %cst_15 = arith.constant dense<0.000000e+00> : vector<8xf32>
    %34 = vector.multi_reduction <add>, %33, %cst_15 [1] : vector<8x8xf32> to vector<8xf32>
    %35 = vector.shape_cast %34 : vector<8xf32> to vector<8x1xf32>
    %36 = vector.extract_strided_slice %13 {offsets = [0, 0], sizes = [8, 8], strides = [1, 1]} : vector<8x32xbf16> to vector<8x8xbf16>
    %37 = arith.truncf %33 : vector<8x8xf32> to vector<8x8xbf16>
    %cst_16 = arith.constant dense<0.000000e+00> : vector<8x8xf32>
    %38 = tpu.matmul %37, %36, %cst_16 {dimension_numbers = #tpu.dot_dimension_numbers<[1], [0], [0], [1], [0, 0, 1, 1], [], []>} : vector<8x8xbf16>, vector<8x8xbf16>, vector<8x8xf32> -> vector<8x8xf32>
    %39 = tpu.reciprocal %35 {approx = true} : vector<8x1xf32> -> vector<8x1xf32>
    %40 = vector.broadcast %39 : vector<8x1xf32> to vector<8x8xf32>
    %41 = arith.mulf %38, %40 : vector<8x8xf32>
    %42 = vector.extract_strided_slice %10 {offsets = [0, 8], sizes = [8, 8], strides = [1, 1]} : vector<8x32xf32> to vector<8x8xf32>
    %43 = vector.extract_strided_slice %12 {offsets = [0, 8], sizes = [8, 8], strides = [1, 1]} : vector<8x32xbf16> to vector<8x8xbf16>
    %44 = arith.truncf %42 : vector<8x8xf32> to vector<8x8xbf16>
    %cst_17 = arith.constant dense<0.000000e+00> : vector<8x8xf32>
    %45 = tpu.matmul %44, %43, %cst_17 {dimension_numbers = #tpu.dot_dimension_numbers<[1], [1], [0], [0], [0, 0, 1, 0], [], []>} : vector<8x8xbf16>, vector<8x8xbf16>, vector<8x8xf32> -> vector<8x8xf32>
    %cst_18 = arith.constant 0.353553385 : f32
    %46 = vector.broadcast %cst_18 : f32 to vector<8x8xf32>
    %47 = arith.mulf %45, %46 : vector<8x8xf32>
    %cst_19 = arith.constant -1.000000e+30 : f32
    %48 = vector.broadcast %cst_19 : f32 to vector<8x8xf32>
    %49 = arith.select %20, %47, %48 : vector<8x8xi1>, vector<8x8xf32>
    %cst_20 = arith.constant dense<0xFF800000> : vector<8xf32>
    %50 = vector.multi_reduction <maximumf>, %49, %cst_20 [1] : vector<8x8xf32> to vector<8xf32>
    %51 = vector.shape_cast %50 : vector<8xf32> to vector<8x1xf32>
    %52 = vector.broadcast %51 : vector<8x1xf32> to vector<8x8xf32>
    %53 = arith.subf %49, %52 : vector<8x8xf32>
    %54 = math.exp %53 : vector<8x8xf32>
    %cst_21 = arith.constant dense<0.000000e+00> : vector<8xf32>
    %55 = vector.multi_reduction <add>, %54, %cst_21 [1] : vector<8x8xf32> to vector<8xf32>
    %56 = vector.shape_cast %55 : vector<8xf32> to vector<8x1xf32>
    %57 = vector.extract_strided_slice %13 {offsets = [0, 8], sizes = [8, 8], strides = [1, 1]} : vector<8x32xbf16> to vector<8x8xbf16>
    %58 = arith.truncf %54 : vector<8x8xf32> to vector<8x8xbf16>
    %cst_22 = arith.constant dense<0.000000e+00> : vector<8x8xf32>
    %59 = tpu.matmul %58, %57, %cst_22 {dimension_numbers = #tpu.dot_dimension_numbers<[1], [0], [0], [1], [0, 0, 1, 1], [], []>} : vector<8x8xbf16>, vector<8x8xbf16>, vector<8x8xf32> -> vector<8x8xf32>
    %60 = tpu.reciprocal %56 {approx = true} : vector<8x1xf32> -> vector<8x1xf32>
    %61 = vector.broadcast %60 : vector<8x1xf32> to vector<8x8xf32>
    %62 = arith.mulf %59, %61 : vector<8x8xf32>
    %63 = vector.extract_strided_slice %10 {offsets = [0, 16], sizes = [8, 8], strides = [1, 1]} : vector<8x32xf32> to vector<8x8xf32>
    %64 = vector.extract_strided_slice %12 {offsets = [0, 16], sizes = [8, 8], strides = [1, 1]} : vector<8x32xbf16> to vector<8x8xbf16>
    %65 = arith.truncf %63 : vector<8x8xf32> to vector<8x8xbf16>
    %cst_23 = arith.constant dense<0.000000e+00> : vector<8x8xf32>
    %66 = tpu.matmul %65, %64, %cst_23 {dimension_numbers = #tpu.dot_dimension_numbers<[1], [1], [0], [0], [0, 0, 1, 0], [], []>} : vector<8x8xbf16>, vector<8x8xbf16>, vector<8x8xf32> -> vector<8x8xf32>
    %cst_24 = arith.constant 0.353553385 : f32
    %67 = vector.broadcast %cst_24 : f32 to vector<8x8xf32>
    %68 = arith.mulf %66, %67 : vector<8x8xf32>
    %cst_25 = arith.constant -1.000000e+30 : f32
    %69 = vector.broadcast %cst_25 : f32 to vector<8x8xf32>
    %70 = arith.select %20, %68, %69 : vector<8x8xi1>, vector<8x8xf32>
    %cst_26 = arith.constant dense<0xFF800000> : vector<8xf32>
    %71 = vector.multi_reduction <maximumf>, %70, %cst_26 [1] : vector<8x8xf32> to vector<8xf32>
    %72 = vector.shape_cast %71 : vector<8xf32> to vector<8x1xf32>
    %73 = vector.broadcast %72 : vector<8x1xf32> to vector<8x8xf32>
    %74 = arith.subf %70, %73 : vector<8x8xf32>
    %75 = math.exp %74 : vector<8x8xf32>
    %cst_27 = arith.constant dense<0.000000e+00> : vector<8xf32>
    %76 = vector.multi_reduction <add>, %75, %cst_27 [1] : vector<8x8xf32> to vector<8xf32>
    %77 = vector.shape_cast %76 : vector<8xf32> to vector<8x1xf32>
    %78 = vector.extract_strided_slice %13 {offsets = [0, 16], sizes = [8, 8], strides = [1, 1]} : vector<8x32xbf16> to vector<8x8xbf16>
    %79 = arith.truncf %75 : vector<8x8xf32> to vector<8x8xbf16>
    %cst_28 = arith.constant dense<0.000000e+00> : vector<8x8xf32>
    %80 = tpu.matmul %79, %78, %cst_28 {dimension_numbers = #tpu.dot_dimension_numbers<[1], [0], [0], [1], [0, 0, 1, 1], [], []>} : vector<8x8xbf16>, vector<8x8xbf16>, vector<8x8xf32> -> vector<8x8xf32>
    %81 = tpu.reciprocal %77 {approx = true} : vector<8x1xf32> -> vector<8x1xf32>
    %82 = vector.broadcast %81 : vector<8x1xf32> to vector<8x8xf32>
    %83 = arith.mulf %80, %82 : vector<8x8xf32>
    %84 = vector.extract_strided_slice %10 {offsets = [0, 24], sizes = [8, 8], strides = [1, 1]} : vector<8x32xf32> to vector<8x8xf32>
    %85 = vector.extract_strided_slice %12 {offsets = [0, 24], sizes = [8, 8], strides = [1, 1]} : vector<8x32xbf16> to vector<8x8xbf16>
    %86 = arith.truncf %84 : vector<8x8xf32> to vector<8x8xbf16>
    %cst_29 = arith.constant dense<0.000000e+00> : vector<8x8xf32>
    %87 = tpu.matmul %86, %85, %cst_29 {dimension_numbers = #tpu.dot_dimension_numbers<[1], [1], [0], [0], [0, 0, 1, 0], [], []>} : vector<8x8xbf16>, vector<8x8xbf16>, vector<8x8xf32> -> vector<8x8xf32>
    %cst_30 = arith.constant 0.353553385 : f32
    %88 = vector.broadcast %cst_30 : f32 to vector<8x8xf32>
    %89 = arith.mulf %87, %88 : vector<8x8xf32>
    %cst_31 = arith.constant -1.000000e+30 : f32
    %90 = vector.broadcast %cst_31 : f32 to vector<8x8xf32>
    %91 = arith.select %20, %89, %90 : vector<8x8xi1>, vector<8x8xf32>
    %cst_32 = arith.constant dense<0xFF800000> : vector<8xf32>
    %92 = vector.multi_reduction <maximumf>, %91, %cst_32 [1] : vector<8x8xf32> to vector<8xf32>
    %93 = vector.shape_cast %92 : vector<8xf32> to vector<8x1xf32>
    %94 = vector.broadcast %93 : vector<8x1xf32> to vector<8x8xf32>
    %95 = arith.subf %91, %94 : vector<8x8xf32>
    %96 = math.exp %95 : vector<8x8xf32>
    %cst_33 = arith.constant dense<0.000000e+00> : vector<8xf32>
    %97 = vector.multi_reduction <add>, %96, %cst_33 [1] : vector<8x8xf32> to vector<8xf32>
    %98 = vector.shape_cast %97 : vector<8xf32> to vector<8x1xf32>
    %99 = vector.extract_strided_slice %13 {offsets = [0, 24], sizes = [8, 8], strides = [1, 1]} : vector<8x32xbf16> to vector<8x8xbf16>
    %100 = arith.truncf %96 : vector<8x8xf32> to vector<8x8xbf16>
    %cst_34 = arith.constant dense<0.000000e+00> : vector<8x8xf32>
    %101 = tpu.matmul %100, %99, %cst_34 {dimension_numbers = #tpu.dot_dimension_numbers<[1], [0], [0], [1], [0, 0, 1, 1], [], []>} : vector<8x8xbf16>, vector<8x8xbf16>, vector<8x8xf32> -> vector<8x8xf32>
    %102 = tpu.reciprocal %98 {approx = true} : vector<8x1xf32> -> vector<8x1xf32>
    %103 = vector.broadcast %102 : vector<8x1xf32> to vector<8x8xf32>
    %104 = arith.mulf %101, %103 : vector<8x8xf32>
    %105 = tpu.concatenate %41, %62, %83, %104 in 1 : vector<8x8xf32>, vector<8x8xf32>, vector<8x8xf32>, vector<8x8xf32> -> vector<8x32xf32>
    %106 = arith.truncf %105 : vector<8x32xf32> to vector<8x32xbf16>
    %cst_35 = arith.constant dense<0.000000e+00> : vector<8x32xf32>
    %107 = tpu.matmul %106, %14, %cst_35 {dimension_numbers = #tpu.dot_dimension_numbers<[1], [0], [0], [1], [0, 0, 1, 1], [], []>} : vector<8x32xbf16>, vector<32x32xbf16>, vector<8x32xf32> -> vector<8x32xf32>
    %c0_36 = arith.constant 0 : index
    %c0_37 = arith.constant 0 : index
    %108 = vector.load %arg9[%c0_36, %c0_37] : memref<1x32xf32, #tpu.memory_space<vmem>>, vector<1x32xf32>
    %109 = vector.broadcast %108 : vector<1x32xf32> to vector<8x32xf32>
    %110 = arith.addf %107, %109 : vector<8x32xf32>
    %c0_38 = arith.constant 0 : index
    %c0_39 = arith.constant 0 : index
    %111 = vector.load %arg10[%c0_38, %c0_39] : memref<1x32xf32, #tpu.memory_space<vmem>>, vector<1x32xf32>
    %c0_40 = arith.constant 0 : index
    %c0_41 = arith.constant 0 : index
    %112 = vector.load %arg11[%c0_40, %c0_41] : memref<1x32xf32, #tpu.memory_space<vmem>>, vector<1x32xf32>
    %113 = arith.addf %4, %110 : vector<8x32xf32>
    %cst_42 = arith.constant dense<0.000000e+00> : vector<8xf32>
    %114 = vector.multi_reduction <add>, %113, %cst_42 [1] : vector<8x32xf32> to vector<8xf32>
    %115 = vector.shape_cast %114 : vector<8xf32> to vector<8x1xf32>
    %cst_43 = arith.constant 3.200000e+01 : f32
    %116 = vector.broadcast %cst_43 : f32 to vector<8x1xf32>
    %117 = arith.divf %115, %116 : vector<8x1xf32>
    %118 = vector.broadcast %117 : vector<8x1xf32> to vector<8x32xf32>
    %119 = arith.subf %113, %118 : vector<8x32xf32>
    %120 = arith.mulf %119, %119 : vector<8x32xf32>
    %cst_44 = arith.constant dense<0.000000e+00> : vector<8xf32>
    %121 = vector.multi_reduction <add>, %120, %cst_44 [1] : vector<8x32xf32> to vector<8xf32>
    %122 = vector.shape_cast %121 : vector<8xf32> to vector<8x1xf32>
    %cst_45 = arith.constant 3.200000e+01 : f32
    %123 = vector.broadcast %cst_45 : f32 to vector<8x1xf32>
    %124 = arith.divf %122, %123 : vector<8x1xf32>
    %125 = vector.broadcast %117 : vector<8x1xf32> to vector<8x32xf32>
    %126 = arith.subf %113, %125 : vector<8x32xf32>
    %cst_46 = arith.constant 9.99999974E-6 : f32
    %127 = vector.broadcast %cst_46 : f32 to vector<8x1xf32>
    %128 = arith.addf %124, %127 : vector<8x1xf32>
    %129 = math.rsqrt %128 : vector<8x1xf32>
    %130 = vector.broadcast %129 : vector<8x1xf32> to vector<8x32xf32>
    %131 = arith.mulf %126, %130 : vector<8x32xf32>
    %132 = vector.broadcast %111 : vector<1x32xf32> to vector<8x32xf32>
    %133 = arith.mulf %131, %132 : vector<8x32xf32>
    %134 = vector.broadcast %112 : vector<1x32xf32> to vector<8x32xf32>
    %135 = arith.addf %133, %134 : vector<8x32xf32>
    %c0_47 = arith.constant 0 : index
    %c0_48 = arith.constant 0 : index
    %c0_49 = arith.constant 0 : index
    %136 = vector.load %arg12[%c0_47, %c0_48, %c0_49] : memref<1x8x32xf32, #tpu.memory_space<vmem>>, vector<1x8x32xf32>
    %137 = vector.shape_cast %136 : vector<1x8x32xf32> to vector<8x32xf32>
    %138 = vector.shape_cast %135 : vector<8x32xf32> to vector<1x8x32xf32>
    tpu.vector_store %arg12[%c0_47, %c0_48, %c0_49], %138 {strides = array<i32>} : memref<1x8x32xf32, #tpu.memory_space<vmem>>, vector<1x8x32xf32>,
    return
  }
  func.func @transform_0(%arg0: i32, %arg1: i32) -> (i32, i32, i32) {
    %c0_i32 = arith.constant 0 : i32
    %c0_i32_0 = arith.constant 0 : i32
    return %arg0, %arg1, %c0_i32 : i32, i32, i32
  }
  func.func @transform_1(%arg0: i32, %arg1: i32) -> (i32, i32, i32) {
    %c0_i32 = arith.constant 0 : i32
    %c0_i32_0 = arith.constant 0 : i32
    %c0_i32_1 = arith.constant 0 : i32
    return %arg0, %c0_i32, %c0_i32_0 : i32, i32, i32
  }
  func.func @transform_2(%arg0: i32, %arg1: i32) -> (i32, i32) {
    %c0_i32 = arith.constant 0 : i32
    %c0_i32_0 = arith.constant 0 : i32
    %c0_i32_1 = arith.constant 0 : i32
    return %c0_i32, %c0_i32_0 : i32, i32
  }
  func.func @transform_3(%arg0: i32, %arg1: i32) -> (i32, i32) {
    %c0_i32 = arith.constant 0 : i32
    %c0_i32_0 = arith.constant 0 : i32
    %c0_i32_1 = arith.constant 0 : i32
    return %c0_i32, %c0_i32_0 : i32, i32
  }
  func.func @transform_4(%arg0: i32, %arg1: i32) -> (i32, i32) {
    %c0_i32 = arith.constant 0 : i32
    %c0_i32_0 = arith.constant 0 : i32
    %c0_i32_1 = arith.constant 0 : i32
    return %c0_i32, %c0_i32_0 : i32, i32
  }
  func.func @transform_5(%arg0: i32, %arg1: i32) -> (i32, i32) {
    %c0_i32 = arith.constant 0 : i32
    %c0_i32_0 = arith.constant 0 : i32
    %c0_i32_1 = arith.constant 0 : i32
    return %c0_i32, %c0_i32_0 : i32, i32
  }
  func.func @transform_6(%arg0: i32, %arg1: i32) -> (i32, i32) {
    %c0_i32 = arith.constant 0 : i32
    %c0_i32_0 = arith.constant 0 : i32
    %c0_i32_1 = arith.constant 0 : i32
    return %c0_i32, %c0_i32_0 : i32, i32
  }
  func.func @transform_7(%arg0: i32, %arg1: i32) -> (i32, i32) {
    %c0_i32 = arith.constant 0 : i32
    %c0_i32_0 = arith.constant 0 : i32
    %c0_i32_1 = arith.constant 0 : i32
    return %c0_i32, %c0_i32_0 : i32, i32
  }
  func.func @transform_8(%arg0: i32, %arg1: i32) -> (i32, i32) {
    %c0_i32 = arith.constant 0 : i32
    %c0_i32_0 = arith.constant 0 : i32
    %c0_i32_1 = arith.constant 0 : i32
    return %c0_i32, %c0_i32_0 : i32, i32
  }
  func.func @transform_9(%arg0: i32, %arg1: i32) -> (i32, i32) {
    %c0_i32 = arith.constant 0 : i32
    %c0_i32_0 = arith.constant 0 : i32
    %c0_i32_1 = arith.constant 0 : i32
    return %c0_i32, %c0_i32_0 : i32, i32
  }
  func.func @transform_10(%arg0: i32, %arg1: i32) -> (i32, i32, i32) {
    %c0_i32 = arith.constant 0 : i32
    %c0_i32_0 = arith.constant 0 : i32
    return %arg0, %arg1, %c0_i32 : i32, i32, i32
  }
}

module attributes {stable_mosaic.version = 11 : i64} {
  func.func @_self_attn_block_kernel(%arg0: i32, %arg1: i32, %arg2: memref<1x8x32xf32, #tpu.memory_space<vmem>>, %arg3: memref<1x8x32xf32, #tpu.memory_space<vmem>>, %arg4: memref<32x96xbf16, #tpu.memory_space<vmem>>, %arg5: memref<1x96xf32, #tpu.memory_space<vmem>>, %arg6: memref<32x32xbf16, #tpu.memory_space<vmem>>, %arg7: memref<1x32xf32, #tpu.memory_space<vmem>>, %arg8: memref<1x32xf32, #tpu.memory_space<vmem>>, %arg9: memref<1x32xf32, #tpu.memory_space<vmem>>, %arg10: memref<1x8x32xf32, #tpu.memory_space<vmem>>, %arg11: memref<8x64xbf16, #tpu.memory_space<vmem>>) attributes {dimension_semantics = [#tpu.dimension_semantics<parallel>, #tpu.dimension_semantics<arbitrary>], iteration_bounds = array<i64: 2, 1>, scalar_prefetch = 0 : i64, scratch_operands = 1 : i64, tpu.core_type = #tpu.core_type<tc>, window_params = [{transform_indices = @transform_0, window_bounds = array<i64: 1, 8, 32>}, {transform_indices = @transform_1, window_bounds = array<i64: 1, 8, 32>}, {pipeline_mode = #tpu.pipeline_mode<synchronous>, transform_indices = @transform_2, window_bounds = array<i64: 32, 96>}, {pipeline_mode = #tpu.pipeline_mode<synchronous>, transform_indices = @transform_3, window_bounds = array<i64: 1, 96>}, {pipeline_mode = #tpu.pipeline_mode<synchronous>, transform_indices = @transform_4, window_bounds = array<i64: 32, 32>}, {pipeline_mode = #tpu.pipeline_mode<synchronous>, transform_indices = @transform_5, window_bounds = array<i64: 1, 32>}, {pipeline_mode = #tpu.pipeline_mode<synchronous>, transform_indices = @transform_6, window_bounds = array<i64: 1, 32>}, {pipeline_mode = #tpu.pipeline_mode<synchronous>, transform_indices = @transform_7, window_bounds = array<i64: 1, 32>}, {transform_indices = @transform_8, window_bounds = array<i64: 1, 8, 32>}]} {
    %c0 = arith.constant 0 : index
    %c0_0 = arith.constant 0 : index
    %0 = vector.load %arg4[%c0, %c0_0] : memref<32x96xbf16, #tpu.memory_space<vmem>>, vector<32x96xbf16>
    %c0_1 = arith.constant 0 : index
    %c0_2 = arith.constant 0 : index
    %1 = vector.load %arg5[%c0_1, %c0_2] : memref<1x96xf32, #tpu.memory_space<vmem>>, vector<1x96xf32>
    %c0_i32 = arith.constant 0 : i32
    %2 = arith.cmpi eq, %arg1, %c0_i32 : i32
    %3 = arith.extui %2 : i1 to i32
    %c0_i32_3 = arith.constant 0 : i32
    %4 = arith.cmpi ne, %3, %c0_i32_3 : i32
    scf.if %4 {
      %c0_50 = arith.constant 0 : index
      %c0_51 = arith.constant 0 : index
      %c0_52 = arith.constant 0 : index
      %141 = vector.load %arg2[%c0_50, %c0_51, %c0_52] : memref<1x8x32xf32, #tpu.memory_space<vmem>>, vector<1x8x32xf32>
      %142 = vector.shape_cast %141 : vector<1x8x32xf32> to vector<8x32xf32>
      %143 = vector.extract_strided_slice %0 {offsets = [0, 32], sizes = [32, 64], strides = [1, 1]} : vector<32x96xbf16> to vector<32x64xbf16>
      %144 = arith.truncf %142 : vector<8x32xf32> to vector<8x32xbf16>
      %cst_53 = arith.constant dense<0.000000e+00> : vector<8x64xf32>
      %145 = tpu.matmul %144, %143, %cst_53 {dimension_numbers = #tpu.dot_dimension_numbers<[1], [0], [0], [1], [0, 0, 1, 1], [], []>} : vector<8x32xbf16>, vector<32x64xbf16>, vector<8x64xf32> -> vector<8x64xf32>
      %146 = vector.extract_strided_slice %1 {offsets = [0, 32], sizes = [1, 64], strides = [1, 1]} : vector<1x96xf32> to vector<1x64xf32>
      %147 = vector.broadcast %146 : vector<1x64xf32> to vector<8x64xf32>
      %148 = arith.addf %145, %147 : vector<8x64xf32>
      %149 = arith.truncf %148 : vector<8x64xf32> to vector<8x64xbf16>
      %c0_54 = arith.constant 0 : index
      %c0_55 = arith.constant 0 : index
      %150 = vector.load %arg11[%c0_54, %c0_55] : memref<8x64xbf16, #tpu.memory_space<vmem>>, vector<8x64xbf16>
      tpu.vector_store %arg11[%c0_54, %c0_55], %149 {strides = array<i32>} : memref<8x64xbf16, #tpu.memory_space<vmem>>, vector<8x64xbf16>,
    } else {
    }
    %c0_4 = arith.constant 0 : index
    %c0_5 = arith.constant 0 : index
    %c0_6 = arith.constant 0 : index
    %5 = vector.load %arg3[%c0_4, %c0_5, %c0_6] : memref<1x8x32xf32, #tpu.memory_space<vmem>>, vector<1x8x32xf32>
    %6 = vector.shape_cast %5 : vector<1x8x32xf32> to vector<8x32xf32>
    %7 = vector.extract_strided_slice %0 {offsets = [0, 0], sizes = [32, 32], strides = [1, 1]} : vector<32x96xbf16> to vector<32x32xbf16>
    %8 = arith.truncf %6 : vector<8x32xf32> to vector<8x32xbf16>
    %cst = arith.constant dense<0.000000e+00> : vector<8x32xf32>
    %9 = tpu.matmul %8, %7, %cst {dimension_numbers = #tpu.dot_dimension_numbers<[1], [0], [0], [1], [0, 0, 1, 1], [], []>} : vector<8x32xbf16>, vector<32x32xbf16>, vector<8x32xf32> -> vector<8x32xf32>
    %10 = vector.extract_strided_slice %1 {offsets = [0, 0], sizes = [1, 32], strides = [1, 1]} : vector<1x96xf32> to vector<1x32xf32>
    %11 = vector.broadcast %10 : vector<1x32xf32> to vector<8x32xf32>
    %12 = arith.addf %9, %11 : vector<8x32xf32>
    %c0_7 = arith.constant 0 : index
    %c0_8 = arith.constant 0 : index
    %13 = vector.load %arg11[%c0_7, %c0_8] : memref<8x64xbf16, #tpu.memory_space<vmem>>, vector<8x64xbf16>
    %14 = vector.extract_strided_slice %13 {offsets = [0, 0], sizes = [8, 32], strides = [1, 1]} : vector<8x64xbf16> to vector<8x32xbf16>
    %15 = vector.extract_strided_slice %13 {offsets = [0, 32], sizes = [8, 32], strides = [1, 1]} : vector<8x64xbf16> to vector<8x32xbf16>
    %c0_9 = arith.constant 0 : index
    %c0_10 = arith.constant 0 : index
    %16 = vector.load %arg6[%c0_9, %c0_10] : memref<32x32xbf16, #tpu.memory_space<vmem>>, vector<32x32xbf16>
    %c8_i32 = arith.constant 8 : i32
    %17 = arith.muli %arg1, %c8_i32 : i32
    %18 = tpu.iota {dimensions = array<i32: 0>} : vector<8x8xi32>
    %19 = vector.broadcast %17 : i32 to vector<8x8xi32>
    %20 = arith.addi %18, %19 : vector<8x8xi32>
    %21 = tpu.iota {dimensions = array<i32: 1>} : vector<8x8xi32>
    %22 = arith.cmpi sge, %20, %21 : vector<8x8xi32>
    %23 = vector.extract_strided_slice %12 {offsets = [0, 0], sizes = [8, 8], strides = [1, 1]} : vector<8x32xf32> to vector<8x8xf32>
    %24 = vector.extract_strided_slice %14 {offsets = [0, 0], sizes = [8, 8], strides = [1, 1]} : vector<8x32xbf16> to vector<8x8xbf16>
    %25 = arith.truncf %23 : vector<8x8xf32> to vector<8x8xbf16>
    %cst_11 = arith.constant dense<0.000000e+00> : vector<8x8xf32>
    %26 = tpu.matmul %25, %24, %cst_11 {dimension_numbers = #tpu.dot_dimension_numbers<[1], [1], [0], [0], [0, 0, 1, 0], [], []>} : vector<8x8xbf16>, vector<8x8xbf16>, vector<8x8xf32> -> vector<8x8xf32>
    %cst_12 = arith.constant 0.353553385 : f32
    %27 = vector.broadcast %cst_12 : f32 to vector<8x8xf32>
    %28 = arith.mulf %26, %27 : vector<8x8xf32>
    %cst_13 = arith.constant -1.000000e+30 : f32
    %29 = vector.broadcast %cst_13 : f32 to vector<8x8xf32>
    %30 = arith.select %22, %28, %29 : vector<8x8xi1>, vector<8x8xf32>
    %cst_14 = arith.constant dense<0xFF800000> : vector<8xf32>
    %31 = vector.multi_reduction <maximumf>, %30, %cst_14 [1] : vector<8x8xf32> to vector<8xf32>
    %32 = vector.shape_cast %31 : vector<8xf32> to vector<8x1xf32>
    %33 = vector.broadcast %32 : vector<8x1xf32> to vector<8x8xf32>
    %34 = arith.subf %30, %33 : vector<8x8xf32>
    %35 = math.exp %34 : vector<8x8xf32>
    %cst_15 = arith.constant dense<0.000000e+00> : vector<8xf32>
    %36 = vector.multi_reduction <add>, %35, %cst_15 [1] : vector<8x8xf32> to vector<8xf32>
    %37 = vector.shape_cast %36 : vector<8xf32> to vector<8x1xf32>
    %38 = vector.extract_strided_slice %15 {offsets = [0, 0], sizes = [8, 8], strides = [1, 1]} : vector<8x32xbf16> to vector<8x8xbf16>
    %39 = arith.truncf %35 : vector<8x8xf32> to vector<8x8xbf16>
    %cst_16 = arith.constant dense<0.000000e+00> : vector<8x8xf32>
    %40 = tpu.matmul %39, %38, %cst_16 {dimension_numbers = #tpu.dot_dimension_numbers<[1], [0], [0], [1], [0, 0, 1, 1], [], []>} : vector<8x8xbf16>, vector<8x8xbf16>, vector<8x8xf32> -> vector<8x8xf32>
    %41 = tpu.reciprocal %37 {approx = true} : vector<8x1xf32> -> vector<8x1xf32>
    %42 = vector.broadcast %41 : vector<8x1xf32> to vector<8x8xf32>
    %43 = arith.mulf %40, %42 : vector<8x8xf32>
    %44 = vector.extract_strided_slice %12 {offsets = [0, 8], sizes = [8, 8], strides = [1, 1]} : vector<8x32xf32> to vector<8x8xf32>
    %45 = vector.extract_strided_slice %14 {offsets = [0, 8], sizes = [8, 8], strides = [1, 1]} : vector<8x32xbf16> to vector<8x8xbf16>
    %46 = arith.truncf %44 : vector<8x8xf32> to vector<8x8xbf16>
    %cst_17 = arith.constant dense<0.000000e+00> : vector<8x8xf32>
    %47 = tpu.matmul %46, %45, %cst_17 {dimension_numbers = #tpu.dot_dimension_numbers<[1], [1], [0], [0], [0, 0, 1, 0], [], []>} : vector<8x8xbf16>, vector<8x8xbf16>, vector<8x8xf32> -> vector<8x8xf32>
    %cst_18 = arith.constant 0.353553385 : f32
    %48 = vector.broadcast %cst_18 : f32 to vector<8x8xf32>
    %49 = arith.mulf %47, %48 : vector<8x8xf32>
    %cst_19 = arith.constant -1.000000e+30 : f32
    %50 = vector.broadcast %cst_19 : f32 to vector<8x8xf32>
    %51 = arith.select %22, %49, %50 : vector<8x8xi1>, vector<8x8xf32>
    %cst_20 = arith.constant dense<0xFF800000> : vector<8xf32>
    %52 = vector.multi_reduction <maximumf>, %51, %cst_20 [1] : vector<8x8xf32> to vector<8xf32>
    %53 = vector.shape_cast %52 : vector<8xf32> to vector<8x1xf32>
    %54 = vector.broadcast %53 : vector<8x1xf32> to vector<8x8xf32>
    %55 = arith.subf %51, %54 : vector<8x8xf32>
    %56 = math.exp %55 : vector<8x8xf32>
    %cst_21 = arith.constant dense<0.000000e+00> : vector<8xf32>
    %57 = vector.multi_reduction <add>, %56, %cst_21 [1] : vector<8x8xf32> to vector<8xf32>
    %58 = vector.shape_cast %57 : vector<8xf32> to vector<8x1xf32>
    %59 = vector.extract_strided_slice %15 {offsets = [0, 8], sizes = [8, 8], strides = [1, 1]} : vector<8x32xbf16> to vector<8x8xbf16>
    %60 = arith.truncf %56 : vector<8x8xf32> to vector<8x8xbf16>
    %cst_22 = arith.constant dense<0.000000e+00> : vector<8x8xf32>
    %61 = tpu.matmul %60, %59, %cst_22 {dimension_numbers = #tpu.dot_dimension_numbers<[1], [0], [0], [1], [0, 0, 1, 1], [], []>} : vector<8x8xbf16>, vector<8x8xbf16>, vector<8x8xf32> -> vector<8x8xf32>
    %62 = tpu.reciprocal %58 {approx = true} : vector<8x1xf32> -> vector<8x1xf32>
    %63 = vector.broadcast %62 : vector<8x1xf32> to vector<8x8xf32>
    %64 = arith.mulf %61, %63 : vector<8x8xf32>
    %65 = vector.extract_strided_slice %12 {offsets = [0, 16], sizes = [8, 8], strides = [1, 1]} : vector<8x32xf32> to vector<8x8xf32>
    %66 = vector.extract_strided_slice %14 {offsets = [0, 16], sizes = [8, 8], strides = [1, 1]} : vector<8x32xbf16> to vector<8x8xbf16>
    %67 = arith.truncf %65 : vector<8x8xf32> to vector<8x8xbf16>
    %cst_23 = arith.constant dense<0.000000e+00> : vector<8x8xf32>
    %68 = tpu.matmul %67, %66, %cst_23 {dimension_numbers = #tpu.dot_dimension_numbers<[1], [1], [0], [0], [0, 0, 1, 0], [], []>} : vector<8x8xbf16>, vector<8x8xbf16>, vector<8x8xf32> -> vector<8x8xf32>
    %cst_24 = arith.constant 0.353553385 : f32
    %69 = vector.broadcast %cst_24 : f32 to vector<8x8xf32>
    %70 = arith.mulf %68, %69 : vector<8x8xf32>
    %cst_25 = arith.constant -1.000000e+30 : f32
    %71 = vector.broadcast %cst_25 : f32 to vector<8x8xf32>
    %72 = arith.select %22, %70, %71 : vector<8x8xi1>, vector<8x8xf32>
    %cst_26 = arith.constant dense<0xFF800000> : vector<8xf32>
    %73 = vector.multi_reduction <maximumf>, %72, %cst_26 [1] : vector<8x8xf32> to vector<8xf32>
    %74 = vector.shape_cast %73 : vector<8xf32> to vector<8x1xf32>
    %75 = vector.broadcast %74 : vector<8x1xf32> to vector<8x8xf32>
    %76 = arith.subf %72, %75 : vector<8x8xf32>
    %77 = math.exp %76 : vector<8x8xf32>
    %cst_27 = arith.constant dense<0.000000e+00> : vector<8xf32>
    %78 = vector.multi_reduction <add>, %77, %cst_27 [1] : vector<8x8xf32> to vector<8xf32>
    %79 = vector.shape_cast %78 : vector<8xf32> to vector<8x1xf32>
    %80 = vector.extract_strided_slice %15 {offsets = [0, 16], sizes = [8, 8], strides = [1, 1]} : vector<8x32xbf16> to vector<8x8xbf16>
    %81 = arith.truncf %77 : vector<8x8xf32> to vector<8x8xbf16>
    %cst_28 = arith.constant dense<0.000000e+00> : vector<8x8xf32>
    %82 = tpu.matmul %81, %80, %cst_28 {dimension_numbers = #tpu.dot_dimension_numbers<[1], [0], [0], [1], [0, 0, 1, 1], [], []>} : vector<8x8xbf16>, vector<8x8xbf16>, vector<8x8xf32> -> vector<8x8xf32>
    %83 = tpu.reciprocal %79 {approx = true} : vector<8x1xf32> -> vector<8x1xf32>
    %84 = vector.broadcast %83 : vector<8x1xf32> to vector<8x8xf32>
    %85 = arith.mulf %82, %84 : vector<8x8xf32>
    %86 = vector.extract_strided_slice %12 {offsets = [0, 24], sizes = [8, 8], strides = [1, 1]} : vector<8x32xf32> to vector<8x8xf32>
    %87 = vector.extract_strided_slice %14 {offsets = [0, 24], sizes = [8, 8], strides = [1, 1]} : vector<8x32xbf16> to vector<8x8xbf16>
    %88 = arith.truncf %86 : vector<8x8xf32> to vector<8x8xbf16>
    %cst_29 = arith.constant dense<0.000000e+00> : vector<8x8xf32>
    %89 = tpu.matmul %88, %87, %cst_29 {dimension_numbers = #tpu.dot_dimension_numbers<[1], [1], [0], [0], [0, 0, 1, 0], [], []>} : vector<8x8xbf16>, vector<8x8xbf16>, vector<8x8xf32> -> vector<8x8xf32>
    %cst_30 = arith.constant 0.353553385 : f32
    %90 = vector.broadcast %cst_30 : f32 to vector<8x8xf32>
    %91 = arith.mulf %89, %90 : vector<8x8xf32>
    %cst_31 = arith.constant -1.000000e+30 : f32
    %92 = vector.broadcast %cst_31 : f32 to vector<8x8xf32>
    %93 = arith.select %22, %91, %92 : vector<8x8xi1>, vector<8x8xf32>
    %cst_32 = arith.constant dense<0xFF800000> : vector<8xf32>
    %94 = vector.multi_reduction <maximumf>, %93, %cst_32 [1] : vector<8x8xf32> to vector<8xf32>
    %95 = vector.shape_cast %94 : vector<8xf32> to vector<8x1xf32>
    %96 = vector.broadcast %95 : vector<8x1xf32> to vector<8x8xf32>
    %97 = arith.subf %93, %96 : vector<8x8xf32>
    %98 = math.exp %97 : vector<8x8xf32>
    %cst_33 = arith.constant dense<0.000000e+00> : vector<8xf32>
    %99 = vector.multi_reduction <add>, %98, %cst_33 [1] : vector<8x8xf32> to vector<8xf32>
    %100 = vector.shape_cast %99 : vector<8xf32> to vector<8x1xf32>
    %101 = vector.extract_strided_slice %15 {offsets = [0, 24], sizes = [8, 8], strides = [1, 1]} : vector<8x32xbf16> to vector<8x8xbf16>
    %102 = arith.truncf %98 : vector<8x8xf32> to vector<8x8xbf16>
    %cst_34 = arith.constant dense<0.000000e+00> : vector<8x8xf32>
    %103 = tpu.matmul %102, %101, %cst_34 {dimension_numbers = #tpu.dot_dimension_numbers<[1], [0], [0], [1], [0, 0, 1, 1], [], []>} : vector<8x8xbf16>, vector<8x8xbf16>, vector<8x8xf32> -> vector<8x8xf32>
    %104 = tpu.reciprocal %100 {approx = true} : vector<8x1xf32> -> vector<8x1xf32>
    %105 = vector.broadcast %104 : vector<8x1xf32> to vector<8x8xf32>
    %106 = arith.mulf %103, %105 : vector<8x8xf32>
    %107 = tpu.concatenate %43, %64, %85, %106 in 1 : vector<8x8xf32>, vector<8x8xf32>, vector<8x8xf32>, vector<8x8xf32> -> vector<8x32xf32>
    %108 = arith.truncf %107 : vector<8x32xf32> to vector<8x32xbf16>
    %cst_35 = arith.constant dense<0.000000e+00> : vector<8x32xf32>
    %109 = tpu.matmul %108, %16, %cst_35 {dimension_numbers = #tpu.dot_dimension_numbers<[1], [0], [0], [1], [0, 0, 1, 1], [], []>} : vector<8x32xbf16>, vector<32x32xbf16>, vector<8x32xf32> -> vector<8x32xf32>
    %c0_36 = arith.constant 0 : index
    %c0_37 = arith.constant 0 : index
    %110 = vector.load %arg7[%c0_36, %c0_37] : memref<1x32xf32, #tpu.memory_space<vmem>>, vector<1x32xf32>
    %111 = vector.broadcast %110 : vector<1x32xf32> to vector<8x32xf32>
    %112 = arith.addf %109, %111 : vector<8x32xf32>
    %c0_38 = arith.constant 0 : index
    %c0_39 = arith.constant 0 : index
    %113 = vector.load %arg8[%c0_38, %c0_39] : memref<1x32xf32, #tpu.memory_space<vmem>>, vector<1x32xf32>
    %c0_40 = arith.constant 0 : index
    %c0_41 = arith.constant 0 : index
    %114 = vector.load %arg9[%c0_40, %c0_41] : memref<1x32xf32, #tpu.memory_space<vmem>>, vector<1x32xf32>
    %115 = arith.addf %6, %112 : vector<8x32xf32>
    %cst_42 = arith.constant dense<0.000000e+00> : vector<8xf32>
    %116 = vector.multi_reduction <add>, %115, %cst_42 [1] : vector<8x32xf32> to vector<8xf32>
    %117 = vector.shape_cast %116 : vector<8xf32> to vector<8x1xf32>
    %cst_43 = arith.constant 3.200000e+01 : f32
    %118 = vector.broadcast %cst_43 : f32 to vector<8x1xf32>
    %119 = arith.divf %117, %118 : vector<8x1xf32>
    %120 = vector.broadcast %119 : vector<8x1xf32> to vector<8x32xf32>
    %121 = arith.subf %115, %120 : vector<8x32xf32>
    %122 = arith.mulf %121, %121 : vector<8x32xf32>
    %cst_44 = arith.constant dense<0.000000e+00> : vector<8xf32>
    %123 = vector.multi_reduction <add>, %122, %cst_44 [1] : vector<8x32xf32> to vector<8xf32>
    %124 = vector.shape_cast %123 : vector<8xf32> to vector<8x1xf32>
    %cst_45 = arith.constant 3.200000e+01 : f32
    %125 = vector.broadcast %cst_45 : f32 to vector<8x1xf32>
    %126 = arith.divf %124, %125 : vector<8x1xf32>
    %127 = vector.broadcast %119 : vector<8x1xf32> to vector<8x32xf32>
    %128 = arith.subf %115, %127 : vector<8x32xf32>
    %cst_46 = arith.constant 9.99999974E-6 : f32
    %129 = vector.broadcast %cst_46 : f32 to vector<8x1xf32>
    %130 = arith.addf %126, %129 : vector<8x1xf32>
    %131 = math.rsqrt %130 : vector<8x1xf32>
    %132 = vector.broadcast %131 : vector<8x1xf32> to vector<8x32xf32>
    %133 = arith.mulf %128, %132 : vector<8x32xf32>
    %134 = vector.broadcast %113 : vector<1x32xf32> to vector<8x32xf32>
    %135 = arith.mulf %133, %134 : vector<8x32xf32>
    %136 = vector.broadcast %114 : vector<1x32xf32> to vector<8x32xf32>
    %137 = arith.addf %135, %136 : vector<8x32xf32>
    %c0_47 = arith.constant 0 : index
    %c0_48 = arith.constant 0 : index
    %c0_49 = arith.constant 0 : index
    %138 = vector.load %arg10[%c0_47, %c0_48, %c0_49] : memref<1x8x32xf32, #tpu.memory_space<vmem>>, vector<1x8x32xf32>
    %139 = vector.shape_cast %138 : vector<1x8x32xf32> to vector<8x32xf32>
    %140 = vector.shape_cast %137 : vector<8x32xf32> to vector<1x8x32xf32>
    tpu.vector_store %arg10[%c0_47, %c0_48, %c0_49], %140 {strides = array<i32>} : memref<1x8x32xf32, #tpu.memory_space<vmem>>, vector<1x8x32xf32>,
    return
  }
  func.func @transform_0(%arg0: i32, %arg1: i32) -> (i32, i32, i32) {
    %c0_i32 = arith.constant 0 : i32
    %c0_i32_0 = arith.constant 0 : i32
    %c0_i32_1 = arith.constant 0 : i32
    return %arg0, %c0_i32, %c0_i32_0 : i32, i32, i32
  }
  func.func @transform_1(%arg0: i32, %arg1: i32) -> (i32, i32, i32) {
    %c0_i32 = arith.constant 0 : i32
    %c0_i32_0 = arith.constant 0 : i32
    return %arg0, %arg1, %c0_i32 : i32, i32, i32
  }
  func.func @transform_2(%arg0: i32, %arg1: i32) -> (i32, i32) {
    %c0_i32 = arith.constant 0 : i32
    %c0_i32_0 = arith.constant 0 : i32
    %c0_i32_1 = arith.constant 0 : i32
    return %c0_i32, %c0_i32_0 : i32, i32
  }
  func.func @transform_3(%arg0: i32, %arg1: i32) -> (i32, i32) {
    %c0_i32 = arith.constant 0 : i32
    %c0_i32_0 = arith.constant 0 : i32
    %c0_i32_1 = arith.constant 0 : i32
    return %c0_i32, %c0_i32_0 : i32, i32
  }
  func.func @transform_4(%arg0: i32, %arg1: i32) -> (i32, i32) {
    %c0_i32 = arith.constant 0 : i32
    %c0_i32_0 = arith.constant 0 : i32
    %c0_i32_1 = arith.constant 0 : i32
    return %c0_i32, %c0_i32_0 : i32, i32
  }
  func.func @transform_5(%arg0: i32, %arg1: i32) -> (i32, i32) {
    %c0_i32 = arith.constant 0 : i32
    %c0_i32_0 = arith.constant 0 : i32
    %c0_i32_1 = arith.constant 0 : i32
    return %c0_i32, %c0_i32_0 : i32, i32
  }
  func.func @transform_6(%arg0: i32, %arg1: i32) -> (i32, i32) {
    %c0_i32 = arith.constant 0 : i32
    %c0_i32_0 = arith.constant 0 : i32
    %c0_i32_1 = arith.constant 0 : i32
    return %c0_i32, %c0_i32_0 : i32, i32
  }
  func.func @transform_7(%arg0: i32, %arg1: i32) -> (i32, i32) {
    %c0_i32 = arith.constant 0 : i32
    %c0_i32_0 = arith.constant 0 : i32
    %c0_i32_1 = arith.constant 0 : i32
    return %c0_i32, %c0_i32_0 : i32, i32
  }
  func.func @transform_8(%arg0: i32, %arg1: i32) -> (i32, i32, i32) {
    %c0_i32 = arith.constant 0 : i32
    %c0_i32_0 = arith.constant 0 : i32
    return %arg0, %arg1, %c0_i32 : i32, i32, i32
  }
}

module attributes {stable_mosaic.version = 11 : i64} {
  func.func @_ffn_block_kernel(%arg0: i32, %arg1: memref<16x32xf32, #tpu.memory_space<vmem>>, %arg2: memref<32x64xbf16, #tpu.memory_space<vmem>>, %arg3: memref<1x64xf32, #tpu.memory_space<vmem>>, %arg4: memref<64x32xbf16, #tpu.memory_space<vmem>>, %arg5: memref<1x32xf32, #tpu.memory_space<vmem>>, %arg6: memref<1x32xf32, #tpu.memory_space<vmem>>, %arg7: memref<1x32xf32, #tpu.memory_space<vmem>>, %arg8: memref<16x32xf32, #tpu.memory_space<vmem>>) attributes {dimension_semantics = [#tpu.dimension_semantics<parallel>], iteration_bounds = array<i64: 1>, scalar_prefetch = 0 : i64, scratch_operands = 0 : i64, tpu.core_type = #tpu.core_type<tc>, window_params = [{transform_indices = @transform_0, window_bounds = array<i64: 16, 32>}, {pipeline_mode = #tpu.pipeline_mode<synchronous>, transform_indices = @transform_1, window_bounds = array<i64: 32, 64>}, {pipeline_mode = #tpu.pipeline_mode<synchronous>, transform_indices = @transform_2, window_bounds = array<i64: 1, 64>}, {pipeline_mode = #tpu.pipeline_mode<synchronous>, transform_indices = @transform_3, window_bounds = array<i64: 64, 32>}, {pipeline_mode = #tpu.pipeline_mode<synchronous>, transform_indices = @transform_4, window_bounds = array<i64: 1, 32>}, {pipeline_mode = #tpu.pipeline_mode<synchronous>, transform_indices = @transform_5, window_bounds = array<i64: 1, 32>}, {pipeline_mode = #tpu.pipeline_mode<synchronous>, transform_indices = @transform_6, window_bounds = array<i64: 1, 32>}, {transform_indices = @transform_7, window_bounds = array<i64: 16, 32>}]} {
    %c0 = arith.constant 0 : index
    %c0_0 = arith.constant 0 : index
    %0 = vector.load %arg1[%c0, %c0_0] : memref<16x32xf32, #tpu.memory_space<vmem>>, vector<16x32xf32>
    %c0_1 = arith.constant 0 : index
    %c0_2 = arith.constant 0 : index
    %1 = vector.load %arg2[%c0_1, %c0_2] : memref<32x64xbf16, #tpu.memory_space<vmem>>, vector<32x64xbf16>
    %2 = arith.truncf %0 : vector<16x32xf32> to vector<16x32xbf16>
    %cst = arith.constant dense<0.000000e+00> : vector<16x64xf32>
    %3 = tpu.matmul %2, %1, %cst {dimension_numbers = #tpu.dot_dimension_numbers<[1], [0], [0], [1], [0, 0, 1, 1], [], []>} : vector<16x32xbf16>, vector<32x64xbf16>, vector<16x64xf32> -> vector<16x64xf32>
    %c0_3 = arith.constant 0 : index
    %c0_4 = arith.constant 0 : index
    %4 = vector.load %arg3[%c0_3, %c0_4] : memref<1x64xf32, #tpu.memory_space<vmem>>, vector<1x64xf32>
    %5 = vector.broadcast %4 : vector<1x64xf32> to vector<16x64xf32>
    %6 = arith.addf %3, %5 : vector<16x64xf32>
    %cst_5 = arith.constant 0.000000e+00 : f32
    %7 = vector.broadcast %cst_5 : f32 to vector<16x64xf32>
    %8 = arith.maximumf %6, %7 : vector<16x64xf32>
    %c0_6 = arith.constant 0 : index
    %c0_7 = arith.constant 0 : index
    %9 = vector.load %arg4[%c0_6, %c0_7] : memref<64x32xbf16, #tpu.memory_space<vmem>>, vector<64x32xbf16>
    %10 = arith.truncf %8 : vector<16x64xf32> to vector<16x64xbf16>
    %cst_8 = arith.constant dense<0.000000e+00> : vector<16x32xf32>
    %11 = tpu.matmul %10, %9, %cst_8 {dimension_numbers = #tpu.dot_dimension_numbers<[1], [0], [0], [1], [0, 0, 1, 1], [], []>} : vector<16x64xbf16>, vector<64x32xbf16>, vector<16x32xf32> -> vector<16x32xf32>
    %c0_9 = arith.constant 0 : index
    %c0_10 = arith.constant 0 : index
    %12 = vector.load %arg5[%c0_9, %c0_10] : memref<1x32xf32, #tpu.memory_space<vmem>>, vector<1x32xf32>
    %13 = vector.broadcast %12 : vector<1x32xf32> to vector<16x32xf32>
    %14 = arith.addf %11, %13 : vector<16x32xf32>
    %c0_11 = arith.constant 0 : index
    %c0_12 = arith.constant 0 : index
    %15 = vector.load %arg6[%c0_11, %c0_12] : memref<1x32xf32, #tpu.memory_space<vmem>>, vector<1x32xf32>
    %c0_13 = arith.constant 0 : index
    %c0_14 = arith.constant 0 : index
    %16 = vector.load %arg7[%c0_13, %c0_14] : memref<1x32xf32, #tpu.memory_space<vmem>>, vector<1x32xf32>
    %17 = arith.addf %0, %14 : vector<16x32xf32>
    %cst_15 = arith.constant dense<0.000000e+00> : vector<16xf32>
    %18 = vector.multi_reduction <add>, %17, %cst_15 [1] : vector<16x32xf32> to vector<16xf32>
    %19 = vector.shape_cast %18 : vector<16xf32> to vector<16x1xf32>
    %cst_16 = arith.constant 3.200000e+01 : f32
    %20 = vector.broadcast %cst_16 : f32 to vector<16x1xf32>
    %21 = arith.divf %19, %20 : vector<16x1xf32>
    %22 = vector.broadcast %21 : vector<16x1xf32> to vector<16x32xf32>
    %23 = arith.subf %17, %22 : vector<16x32xf32>
    %24 = arith.mulf %23, %23 : vector<16x32xf32>
    %cst_17 = arith.constant dense<0.000000e+00> : vector<16xf32>
    %25 = vector.multi_reduction <add>, %24, %cst_17 [1] : vector<16x32xf32> to vector<16xf32>
    %26 = vector.shape_cast %25 : vector<16xf32> to vector<16x1xf32>
    %cst_18 = arith.constant 3.200000e+01 : f32
    %27 = vector.broadcast %cst_18 : f32 to vector<16x1xf32>
    %28 = arith.divf %26, %27 : vector<16x1xf32>
    %29 = vector.broadcast %21 : vector<16x1xf32> to vector<16x32xf32>
    %30 = arith.subf %17, %29 : vector<16x32xf32>
    %cst_19 = arith.constant 9.99999974E-6 : f32
    %31 = vector.broadcast %cst_19 : f32 to vector<16x1xf32>
    %32 = arith.addf %28, %31 : vector<16x1xf32>
    %33 = math.rsqrt %32 : vector<16x1xf32>
    %34 = vector.broadcast %33 : vector<16x1xf32> to vector<16x32xf32>
    %35 = arith.mulf %30, %34 : vector<16x32xf32>
    %36 = vector.broadcast %15 : vector<1x32xf32> to vector<16x32xf32>
    %37 = arith.mulf %35, %36 : vector<16x32xf32>
    %38 = vector.broadcast %16 : vector<1x32xf32> to vector<16x32xf32>
    %39 = arith.addf %37, %38 : vector<16x32xf32>
    %c0_20 = arith.constant 0 : index
    %c0_21 = arith.constant 0 : index
    %40 = vector.load %arg8[%c0_20, %c0_21] : memref<16x32xf32, #tpu.memory_space<vmem>>, vector<16x32xf32>
    tpu.vector_store %arg8[%c0_20, %c0_21], %39 {strides = array<i32>} : memref<16x32xf32, #tpu.memory_space<vmem>>, vector<16x32xf32>,
    return
  }
  func.func @transform_0(%arg0: i32) -> (i32, i32) {
    %c0_i32 = arith.constant 0 : i32
    %c0_i32_0 = arith.constant 0 : i32
    return %arg0, %c0_i32 : i32, i32
  }
  func.func @transform_1(%arg0: i32) -> (i32, i32) {
    %c0_i32 = arith.constant 0 : i32
    %c0_i32_0 = arith.constant 0 : i32
    %c0_i32_1 = arith.constant 0 : i32
    return %c0_i32, %c0_i32_0 : i32, i32
  }
  func.func @transform_2(%arg0: i32) -> (i32, i32) {
    %c0_i32 = arith.constant 0 : i32
    %c0_i32_0 = arith.constant 0 : i32
    %c0_i32_1 = arith.constant 0 : i32
    return %c0_i32, %c0_i32_0 : i32, i32
  }
  func.func @transform_3(%arg0: i32) -> (i32, i32) {
    %c0_i32 = arith.constant 0 : i32
    %c0_i32_0 = arith.constant 0 : i32
    %c0_i32_1 = arith.constant 0 : i32
    return %c0_i32, %c0_i32_0 : i32, i32
  }
  func.func @transform_4(%arg0: i32) -> (i32, i32) {
    %c0_i32 = arith.constant 0 : i32
    %c0_i32_0 = arith.constant 0 : i32
    %c0_i32_1 = arith.constant 0 : i32
    return %c0_i32, %c0_i32_0 : i32, i32
  }
  func.func @transform_5(%arg0: i32) -> (i32, i32) {
    %c0_i32 = arith.constant 0 : i32
    %c0_i32_0 = arith.constant 0 : i32
    %c0_i32_1 = arith.constant 0 : i32
    return %c0_i32, %c0_i32_0 : i32, i32
  }
  func.func @transform_6(%arg0: i32) -> (i32, i32) {
    %c0_i32 = arith.constant 0 : i32
    %c0_i32_0 = arith.constant 0 : i32
    %c0_i32_1 = arith.constant 0 : i32
    return %c0_i32, %c0_i32_0 : i32, i32
  }
  func.func @transform_7(%arg0: i32) -> (i32, i32) {
    %c0_i32 = arith.constant 0 : i32
    %c0_i32_0 = arith.constant 0 : i32
    return %arg0, %c0_i32 : i32, i32
  }
}

module attributes {stable_mosaic.version = 11 : i64} {
  func.func @_linear_kernel(%arg0: i32, %arg1: i32, %arg2: i32, %arg3: memref<16x128xf32, #tpu.memory_space<vmem>>, %arg4: memref<128x128xbf16, #tpu.memory_space<vmem>>, %arg5: memref<1x128xf32, #tpu.memory_space<vmem>>, %arg6: memref<16x128xf32, #tpu.memory_space<vmem>>, %arg7: memref<16x128xf32, #tpu.memory_space<vmem>>) attributes {dimension_semantics = [#tpu.dimension_semantics<parallel>, #tpu.dimension_semantics<parallel>, #tpu.dimension_semantics<arbitrary>], iteration_bounds = array<i64: 1, 1, 1>, scalar_prefetch = 0 : i64, scratch_operands = 1 : i64, tpu.core_type = #tpu.core_type<tc>, window_params = [{transform_indices = @transform_0, window_bounds = array<i64: 16, 128>}, {transform_indices = @transform_1, window_bounds = array<i64: 128, 128>}, {transform_indices = @transform_2, window_bounds = array<i64: 1, 128>}, {transform_indices = @transform_3, window_bounds = array<i64: 16, 128>}]} {
    %c0_i32 = arith.constant 0 : i32
    %0 = arith.cmpi eq, %arg2, %c0_i32 : i32
    %1 = arith.extui %0 : i1 to i32
    %c0_i32_0 = arith.constant 0 : i32
    %2 = arith.cmpi ne, %1, %c0_i32_0 : i32
    scf.if %2 {
      %cst_10 = arith.constant 0.000000e+00 : f32
      %13 = vector.broadcast %cst_10 : f32 to vector<16x128xf32>
      %c0_11 = arith.constant 0 : index
      %c0_12 = arith.constant 0 : index
      %14 = vector.load %arg7[%c0_11, %c0_12] : memref<16x128xf32, #tpu.memory_space<vmem>>, vector<16x128xf32>
      tpu.vector_store %arg7[%c0_11, %c0_12], %13 {strides = array<i32>} : memref<16x128xf32, #tpu.memory_space<vmem>>, vector<16x128xf32>,
    } else {
    }
    %c0 = arith.constant 0 : index
    %c0_1 = arith.constant 0 : index
    %3 = vector.load %arg7[%c0, %c0_1] : memref<16x128xf32, #tpu.memory_space<vmem>>, vector<16x128xf32>
    %c0_2 = arith.constant 0 : index
    %c0_3 = arith.constant 0 : index
    %4 = vector.load %arg3[%c0_2, %c0_3] : memref<16x128xf32, #tpu.memory_space<vmem>>, vector<16x128xf32>
    %c0_4 = arith.constant 0 : index
    %c0_5 = arith.constant 0 : index
    %5 = vector.load %arg4[%c0_4, %c0_5] : memref<128x128xbf16, #tpu.memory_space<vmem>>, vector<128x128xbf16>
    %6 = arith.truncf %4 : vector<16x128xf32> to vector<16x128xbf16>
    %cst = arith.constant dense<0.000000e+00> : vector<16x128xf32>
    %7 = tpu.matmul %6, %5, %cst {dimension_numbers = #tpu.dot_dimension_numbers<[1], [0], [0], [1], [0, 0, 1, 1], [], []>} : vector<16x128xbf16>, vector<128x128xbf16>, vector<16x128xf32> -> vector<16x128xf32>
    %8 = arith.addf %3, %7 : vector<16x128xf32>
    %c0_6 = arith.constant 0 : index
    %c0_7 = arith.constant 0 : index
    %9 = vector.load %arg7[%c0_6, %c0_7] : memref<16x128xf32, #tpu.memory_space<vmem>>, vector<16x128xf32>
    tpu.vector_store %arg7[%c0_6, %c0_7], %8 {strides = array<i32>} : memref<16x128xf32, #tpu.memory_space<vmem>>, vector<16x128xf32>,
    %c0_i32_8 = arith.constant 0 : i32
    %10 = arith.cmpi eq, %arg2, %c0_i32_8 : i32
    %11 = arith.extui %10 : i1 to i32
    %c0_i32_9 = arith.constant 0 : i32
    %12 = arith.cmpi ne, %11, %c0_i32_9 : i32
    scf.if %12 {
      %c0_10 = arith.constant 0 : index
      %c0_11 = arith.constant 0 : index
      %13 = vector.load %arg7[%c0_10, %c0_11] : memref<16x128xf32, #tpu.memory_space<vmem>>, vector<16x128xf32>
      %c0_12 = arith.constant 0 : index
      %c0_13 = arith.constant 0 : index
      %14 = vector.load %arg5[%c0_12, %c0_13] : memref<1x128xf32, #tpu.memory_space<vmem>>, vector<1x128xf32>
      %15 = vector.broadcast %14 : vector<1x128xf32> to vector<16x128xf32>
      %16 = arith.addf %13, %15 : vector<16x128xf32>
      %c0_14 = arith.constant 0 : index
      %c0_15 = arith.constant 0 : index
      %17 = vector.load %arg6[%c0_14, %c0_15] : memref<16x128xf32, #tpu.memory_space<vmem>>, vector<16x128xf32>
      tpu.vector_store %arg6[%c0_14, %c0_15], %16 {strides = array<i32>} : memref<16x128xf32, #tpu.memory_space<vmem>>, vector<16x128xf32>,
    } else {
    }
    return
  }
  func.func @transform_0(%arg0: i32, %arg1: i32, %arg2: i32) -> (i32, i32) {
    %c0_i32 = arith.constant 0 : i32
    return %arg0, %arg2 : i32, i32
  }
  func.func @transform_1(%arg0: i32, %arg1: i32, %arg2: i32) -> (i32, i32) {
    %c0_i32 = arith.constant 0 : i32
    return %arg2, %arg1 : i32, i32
  }
  func.func @transform_2(%arg0: i32, %arg1: i32, %arg2: i32) -> (i32, i32) {
    %c0_i32 = arith.constant 0 : i32
    %c0_i32_0 = arith.constant 0 : i32
    return %c0_i32, %arg1 : i32, i32
  }
  func.func @transform_3(%arg0: i32, %arg1: i32, %arg2: i32) -> (i32, i32) {
    %c0_i32 = arith.constant 0 : i32
    return %arg0, %arg1 : i32, i32
  }
}

</mosaic_0001>

<bundles_post_ra>
// kernel: harmonia_forward.13
= control target key start
LH: loop header
LB: loop body
LE: loop exit
PB: predicated region body
PF: predicated region fallthrough
CT: control target
= control target key end

     0   :  { %v203_v0 = vmov 0.0   ;;  %vm204_vm0 = vmmov 0   ;;  %s264_s1 = inlined_call_operand.vmem [shape: bf16[128,128], index: 1, kind: input, shape index: {}]   ;;  %s265_s0 = inlined_call_operand.vmem [shape: f32[16,128], index: 0, kind: input, shape index: {}]   ;;  %s266_s2 = inlined_call_operand.vmem [shape: f32[1,128], index: 2, kind: input, shape index: {}]   ;;  %s267_s3 = inlined_call_operand.vmem [shape: f32[16,128], index: 3, kind: output, shape index: {}]  }
   0x1   :  { %173 = vmatprep.subr.bf16.mxu0 %v203_v0  ;;  %v195_v1 = vld [vmem:[%s264_s1 + $0x38] sm:$0xff]   ;;  %189 = vmatprep.mubr.msk.bf16.mxu0 %vm204_vm0, %v203_v0  ;;  %v196_v2 = vld [vmem:[%s264_s1 + $0x30] sm:$0xff]   ;;  %v197_v3 = vld [vmem:[%s264_s1 + $0x28] sm:$0xff]  }
   0x2   :  { %174 = vmatpush3.bf16.msra.mxu0 %v195_v1  ;;  %v198_v4 = vld [vmem:[%s264_s1 + $0x20] sm:$0xff]   ;;  %v199_v5 = vld [vmem:[%s264_s1 + $0x18] sm:$0xff]   ;;  %v200_v6 = vld [vmem:[%s264_s1 + $0x10] sm:$0xff]  }
   0x3   :  { %175 = vmatprep.subr.bf16.mxu0 %v203_v0  ;;  %v201_v7 = vld [vmem:[%s264_s1 + $0x8] sm:$0xff]   ;;  %v202_v8 = vld [vmem:[%s264_s1] sm:$0xff]  }
   0x4   :  { %v23_v9 = vld [vmem:[%s265_s0] sm:$0xff]  ;;  %v24_v10 = vld [vmem:[%s265_s0 + $0x8] sm:$0xff] }
   0x5   :  { %v41_v11 = vpack.c.bf16 %v24_v10, %v23_v9  ;;  %v163_v12 = vld [vmem:[%s266_s2] ss:$0 sm:$0xff] }
   0x6   :  { %176 = vmatpush3.bf16.msra.mxu0 %v196_v2 }
   0x7   :  { %177 = vmatprep.subr.bf16.mxu0 %v203_v0 }
   0xa   :  { %178 = vmatpush3.bf16.msra.mxu0 %v197_v3 }
   0xb   :  { %179 = vmatprep.subr.bf16.mxu0 %v203_v0 }
   0xe   :  { %180 = vmatpush3.bf16.msra.mxu0 %v198_v4 }
   0xf   :  { %181 = vmatprep.subr.bf16.mxu0 %v203_v0 }
  0x12   :  { %182 = vmatpush3.bf16.msra.mxu0 %v199_v5 }
  0x13   :  { %183 = vmatprep.subr.bf16.mxu0 %v203_v0 }
  0x16   :  { %184 = vmatpush3.bf16.msra.mxu0 %v200_v6 }
  0x17   :  { %185 = vmatprep.subr.bf16.mxu0 %v203_v0 }
  0x1a   :  { %186 = vmatpush3.bf16.msra.mxu0 %v201_v7 }
  0x1b   :  { %187 = vmatprep.subr.bf16.mxu0 %v203_v0 }
  0x1e   :  { %188 = vmatpush3.bf16.msra.mxu0 %v202_v8 }
  0x21   :  { %190 = vmatmul.mubr.bf16.vlgmr.msra.gmra.mxu0 %v41_v11 }
  0xe1   :  { %v124_v13 = vpop.f32.mrf.mxu0 }
  0xe2   :  { %v147_v14 = vadd.f32 %v163_v12, %v124_v13 }
  0xe3   :  { %v191_v15 = vpop.f32.mrf.mxu0 }
  0xe4   :  { %149 = vst [vmem:[%s267_s3] sm:$0xff] %v147_v14 }
  0xe5   :  { %v127_v16 = vpop.f32.mrf.mxu0 }
  0xe6   :  { %v148_v17 = vadd.f32 %v163_v12, %v127_v16 }
  0xe7   :  { %v192_v18 = vpop.f32.mrf.mxu0 }
  0xe8   :  { %150 = vst [vmem:[%s267_s3 + $0x8] sm:$0xff] %v148_v17 }

// kernel: harmonia_forward.9
= control target key start
LH: loop header
LB: loop body
LE: loop exit
PB: predicated region body
PF: predicated region fallthrough
CT: control target
= control target key end

     0   :  { %v290_v0 = vmov 0.0   ;;  %vm291_vm0 = vmmov 0   ;;  %vm53_vm1 = vcmask 261120   ;;  %vm140_vm2 = vcmask 523264   ;;  %s381_s1 = inlined_call_operand.vmem [shape: bf16[32,64], index: 1, kind: input, shape index: {}]   ;;  %s382_s0 = inlined_call_operand.vmem [shape: f32[16,32], index: 0, kind: input, shape index: {}]   ;;  %s383_s3 = inlined_call_operand.vmem [shape: bf16[64,32], index: 3, kind: input, shape index: {}]   ;;  %s384_s2 = inlined_call_operand.vmem [shape: f32[1,64], index: 2, kind: input, shape index: {}]   ;;  %s385_s4 = inlined_call_operand.vmem [shape: f32[1,32], index: 4, kind: input, shape index: {}]   ;;  %s386_s5 = inlined_call_operand.vmem [shape: f32[1,32], index: 5, kind: input, shape index: {}]   ;;  %s387_s6 = inlined_call_operand.vmem [shape: f32[1,32], index: 6, kind: input, shape index: {}]   ;;  %s388_s7 = inlined_call_operand.vmem [shape: f32[16,32], index: 7, kind: output, shape index: {}]  }
   0x1   :  { %258 = vmatprep.subr.bf16.mxu0 %v290_v0  ;;  %v280_v1 = vld [vmem:[%s381_s1 + $0x8] sm:$0xff]   ;;  %262 = vmatprep.mubr.msk.bf16.mxu0 %vm291_vm0, %v290_v0  ;;  %v281_v2 = vld [vmem:[%s381_s1] sm:$0xff]   ;;  %v282_v5 = vld [vmem:[%s383_s3 + $0x18] sm:$0xff]  }
   0x2   :  { %266 = vmatprep.subr.bf16.mxu1 %v290_v0  ;;  %274 = vmatprep.mubr.msk.bf16.mxu1 %vm291_vm0, %v290_v0  ;;  %v27_v3 = vld [vmem:[%s382_s0] sm:$0xff]  ;;  %v28_v4 = vld [vmem:[%s382_s0 + $0x8] sm:$0xff]  ;;  %v283_v7 = vld [vmem:[%s383_s3 + $0x10] sm:$0xff]  }
   0x3   :  { %259 = vmatpush3.bf16.msra.mxu0 %v280_v1  ;;  %v33_v6 = vpack.c.bf16 %v28_v4, %v27_v3  ;;  %267 = vmatpush3.bf16.msra.mxu1 %v282_v5  ;;  %v284_v8 = vld [vmem:[%s383_s3 + $0x8] sm:$0xff]   ;;  %v285_v9 = vld [vmem:[%s383_s3] sm:$0xff]  }
   0x4   :  { %260 = vmatprep.subr.bf16.mxu0 %v290_v0  ;;  %268 = vmatprep.subr.bf16.mxu1 %v290_v0  ;;  %v238_v10 = vld [vmem:[%s384_s2] ss:$0 sm:$0xff] }
   0x5   :  { %v242_v20 = vld [vmem:[%s385_s4] ss:$0 sm:$0xff] }
   0x6   :  { %v248_v48 = vld [vmem:[%s386_s5] ss:$0 sm:$0xff] }
   0x7   :  { %261 = vmatpush3.bf16.msra.mxu0 %v281_v2  ;;  %269 = vmatpush3.bf16.msra.mxu1 %v283_v7  ;;  %v249_v50 = vld [vmem:[%s387_s6] ss:$0 sm:$0xff] }
   0x8   :  { %270 = vmatprep.subr.bf16.mxu1 %v290_v0 }
   0xa   :  { %263 = vmatmul.mubr.msk.bf16.vlgmr.msra.gmra.mxu0 %vm53_vm1, %v33_v6 }
   0xb   :  { %271 = vmatpush3.bf16.msra.mxu1 %v284_v8 }
   0xc   :  { %272 = vmatprep.subr.bf16.mxu1 %v290_v0 }
   0xf   :  { %273 = vmatpush3.bf16.msra.mxu1 %v285_v9 }
  0xca   :  { %v91_v11 = vpop.f32.mrf.mxu0 }
  0xcb   :  { %v92_v13 = vadd.f32 %v238_v10, %v91_v11 }
  0xcc   :  { %v264_v12 = vpop.f32.mrf.mxu0 }
  0xcd   :  { %v98_v17 = vmax.f32 %v92_v13, 0.0 }
  0xce   :  { %v94_v14 = vpop.f32.mrf.mxu0 }
  0xcf   :  { %v95_v15 = vadd.f32 %v238_v10, %v94_v14 }
  0xd0   :  { %v265_v16 = vpop.f32.mrf.mxu0 }
  0xd1   :  { %v99_v18 = vmax.f32 %v95_v15, 0.0 }
  0xd3   :  { %v108_v19 = vpack.c.bf16 %v99_v18, %v98_v17 }
  0xd5   :  { %275 = vmatmul.mubr.msk.bf16.vlgmr.msra.gmra.mxu1 %vm140_vm2, %v108_v19 }
 0x195   :  { %v178_v21 = vpop.f32.mrf.mxu1 }
 0x196   :  { %v179_v22 = vadd.f32 %v242_v20, %v178_v21 }
 0x197   :  { %v276_v23 = vpop.f32.mrf.mxu1 }
 0x198   :  { %v187_v24 = vadd.f32 %v179_v22, %v27_v3 }
 0x199   :  { %v181_v25 = vpop.f32.mrf.mxu1 }
 0x19a   :  { %v182_v26 = vadd.f32 %v242_v20, %v181_v25  ;;  %v189_v27 = vsel %vm53_vm1, %v187_v24, 0.0 }
 0x19b   :  { %190 = vadd.xlane.f32.xlu0 %v189_v27  ;;  %v277_v28 = vpop.f32.mrf.mxu1 }
 0x19c   :  { %v188_v29 = vadd.f32 %v182_v26, %v28_v4 }
 0x19e   :  { %v192_v30 = vsel %vm53_vm1, %v188_v29, 0.0 }
 0x19f   :  { %193 = vadd.xlane.f32.xlu0 %v192_v30 }
 0x224   :  { %v191_v31 = vpop.xlane.xlu0 %190 }
 0x225   :  { %v196_v32 = vmul.f32 0.03125, %v191_v31 }
 0x227   :  { %v198_v33 = vsub.f32 %v187_v24, %v196_v32 }
 0x228   :  { %v194_v34 = vpop.xlane.xlu0 %193 }
 0x229   :  { %v197_v35 = vmul.f32 0.03125, %v194_v34  ;;  %v200_v36 = vmul.f32 %v198_v33, %v198_v33 }
 0x22b   :  { %v199_v37 = vsub.f32 %v188_v29, %v197_v35  ;;  %v202_v38 = vsel %vm53_vm1, %v200_v36, 0.0 }
 0x22c   :  { %203 = vadd.xlane.f32.xlu1 %v202_v38 }
 0x22d   :  { %v201_v39 = vmul.f32 %v199_v37, %v199_v37 }
 0x22f   :  { %v205_v40 = vsel %vm53_vm1, %v201_v39, 0.0 }
 0x230   :  { %206 = vadd.xlane.f32.xlu1 %v205_v40 }
 0x2b5   :  { %v204_v41 = vpop.xlane.xlu1 %203 }
 0x2b6   :  { %v208_v42 = vmul.f32 0.03125, %v204_v41 }
 0x2b8   :  { %v210_v43 = vadd.f32 1e-05, %v208_v42 }
 0x2b9   :  { %v207_v44 = vpop.xlane.xlu1 %206 }
 0x2ba   :  { %286 = vrsqrt.f32 %v210_v43  ;;  %v209_v45 = vmul.f32 0.03125, %v207_v44 }
 0x2bc   :  { %v211_v46 = vadd.f32 1e-05, %v209_v45 }
 0x2be   :  { %288 = vrsqrt.f32 %v211_v46 }
 0x2c7   :  { %v287_v47 = vpop.eup %286 }
 0x2c8   :  { %v214_v49 = vmul.f32 %v287_v47, %v198_v33 }
 0x2ca   :  { %v222_v51 = vmul.f32 %v248_v48, %v214_v49 }
 0x2cb   :  { %v289_v52 = vpop.eup %288 }
 0x2cc   :  { %v230_v53 = vadd.f32 %v249_v50, %v222_v51  ;;  %v215_v54 = vmul.f32 %v289_v52, %v199_v37 }
 0x2ce   :  { %232 = vst.msk [vmem:[%s388_s7] sm:$0xff] %vm53_vm1, %v230_v53  ;;  %v223_v55 = vmul.f32 %v248_v48, %v215_v54 }
 0x2d0   :  { %v231_v56 = vadd.f32 %v249_v50, %v223_v55 }
 0x2d2   :  { %233 = vst.msk [vmem:[%s388_s7 + $0x8] sm:$0xff] %vm53_vm1, %v231_v56 }

// kernel: harmonia_forward.8
= control target key start
LH: loop header
LB: loop body
LE: loop exit
PB: predicated region body
PF: predicated region fallthrough
CT: control target
= control target key end

     0   :  { %s1493_s13 = smov 0   ;;  %s1495_s14 = smov 0   ;;  %s1652_s0 = inlined_call_operand.vmem [shape: f32[2,8,32], index: 0, kind: input, shape index: {}]   ;;  %s1653_s1 = inlined_call_operand.vmem [shape: f32[2,8,32], index: 1, kind: input, shape index: {}]   ;;  %s1654_s2 = inlined_call_operand.vmem [shape: bf16[32,32], index: 2, kind: input, shape index: {}]   ;;  %s1655_s3 = inlined_call_operand.vmem [shape: f32[1,32], index: 3, kind: input, shape index: {}]   ;;  %s1656_s4 = inlined_call_operand.vmem [shape: bf16[32,64], index: 4, kind: input, shape index: {}]   ;;  %s1657_s5 = inlined_call_operand.vmem [shape: f32[1,64], index: 5, kind: input, shape index: {}]   ;;  %s1658_s6 = inlined_call_operand.vmem [shape: bf16[32,32], index: 6, kind: input, shape index: {}]   ;;  %s1659_s7 = inlined_call_operand.vmem [shape: f32[1,32], index: 7, kind: input, shape index: {}]   ;;  %s1660_s8 = inlined_call_operand.vmem [shape: f32[1,32], index: 8, kind: input, shape index: {}]   ;;  %s1661_s9 = inlined_call_operand.vmem [shape: f32[1,32], index: 9, kind: input, shape index: {}]   ;;  %s1662_s10 = inlined_call_operand.vmem [shape: f32[2,8,32], index: 10, kind: output, shape index: {}]  }
   0x1   :  { %s1497_s15 = smov 0  }
   0x2 LB: > { %s32_s16 = sadd.s32 1, %s1420_s14  ;;  %p1215_p0 = scmp.ge.s32.totalorder %s1424_s15, 1  ;;  %s1424_s15 = sphi %s1497_s15, %s20_s15   ;;  %s1420_s14 = sphi %s1495_s14, %s1664_s14   ;;  %s1416_s13 = sphi %s1493_s13, %s1663_s13  }
   0x3   : > { %p34_p1 = scmp.ge.s32.totalorder %s32_s16, 2  ;;  %p339_p2 = scmp.lt.s32.totalorder %s1424_s15, 3 }
   0x5   : > { %s1666_s16 = smov (%p34_p1, %s32_s16), 0  ;;  %p340_p3 = pnand %p1215_p0, %p339_p2 }
   0x6   : > { %p385_p4 = scmp.lt.s32.totalorder (!%p340_p3), %s1416_s13, 1  ;;  %s1428_s19 = smov (!%p340_p3), 112  }
   0x7   : > { %343 = sbr.rel (%p340_p3) target bundleno = 1545 (0x609), region = 60  ;;  %s1429_s20 = smov (!%p340_p3), 120  }
   0x8   : > { %s1430_s21 = smov (!%p340_p3), 104   ;;  %s1431_s22 = smov (!%p340_p3), 96  }
   0x9   : > { %s1432_s23 = smov (!%p340_p3), 80   ;;  %s1433_s24 = smov (!%p340_p3), 72  }
   0xa   : > { %s1434_s26 = smov (!%p340_p3), 88   ;;  %s1435_s29 = smov (!%p340_p3), 8  }
   0xb   : > { %s1436_s12 = smov (!%p340_p3), 16  }
   0xc   : > { %v1377_v0 = vld [vmem:[%s1656_s4 + $0x8] sm:$0xff]   ;;  %v1426_v1 = vmov 0.0   ;;  %v1378_v2 = vld [vmem:[%s1656_s4] sm:$0xff]   ;;  %vm1427_vm0 = vmmov 0   ;;  %s1668_s13 = smov (!%p385_p4, %s1416_s13), 1  ;;  %vm433_vm1 = vcmask 261120   ;;  %v555_v37 = vlaneseq }
   0xd   : > { %1269 = vmatprep.subr.bf16.mxu0 %v1426_v1  ;;  %1277 = vmatprep.subr.bf16.mxu1 %v1426_v1  ;;  %v1379_v3 = vld [vmem:[%s1654_s2 + $0x8] sm:$0xff]   ;;  %v1380_v4 = vld [vmem:[%s1654_s2] sm:$0xff]   ;;  %s1530_s25 = sshll.u32 %s1668_s13, 3  ;;  %vm478_vm2 = vcmask 519168   ;;  %vm563_vm3 = vcmask 64512   ;;  %vm630_vm4 = vcmask 1043456  }
   0xe   : > { %1270 = vmatpush3.bf16.msra.mxu0 %v1377_v0  ;;  %1273 = vmatprep.mubr.msk.bf16.mxu0 %vm1427_vm0, %v1426_v1  ;;  %s395_s28 = scalar_lea.vmem %s1653_s1, %s1530_s25  ;;  %s391_s11 = scalar_lea.vmem %s1652_s0, %s1530_s25  ;;  %v1219_v9 = vld [vmem:[%s1657_s5] ss:$0 sm:$0xff]  ;;  %v556_v38 = vshrl.u32 %v555_v37, 7  ;;  %v560_v39 = vand.u32 127, %v555_v37  ;;  %vm1026_vm6 = vcmask 130048   ;;  %vm1028_vm7 = vcmask 195584  }
   0xf   : > { %1271 = vmatprep.subr.bf16.mxu0 %v1426_v1  ;;  %1281 = vmatprep.mubr.msk.bf16.mxu1 %vm1427_vm0, %v1426_v1  ;;  %v408_v5 = vld [vmem:[%s395_s28] sm:$0xff]  ;;  %s1437_s13 = smov 24  }
  0x10   : > { %1278 = vmatpush3.bf16.msra.mxu1 %v1379_v3  ;;  %v413_v6 = vpack.c.bf16 %v408_v5, %v408_v5  ;;  %v1542_v7 = vld [vmem:[%s391_s11] sm:$0xff]  ;;  %vm561_vm5 = vcmp.ge.s32.totalorder %v556_v38, %v560_v39 }
  0x11   : > { %1279 = vmatprep.subr.bf16.mxu1 %v1426_v1  ;;  %v485_v8 = vpack.c.bf16 %v1542_v7, %v1542_v7  ;;  %v1223_v20 = vld [vmem:[%s1655_s3] ss:$0 sm:$0xff] }
  0x12   : > { %1272 = vmatpush3.bf16.msra.mxu0 %v1378_v2 }
  0x13   : > { %1285 = vmatprep.subr.bf16.mxu0 %v1426_v1 }
  0x14   : > { %1280 = vmatpush3.bf16.msra.mxu1 %v1380_v4 }
  0x15   : > { %1291 = vmatprep.subr.bf16.mxu1 %v1426_v1  ;;  %1274 = vmatmul.mubr.msk.bf16.vlgmr.msra.gmra.mxu0 %vm433_vm1, %v413_v6 }
  0x16   : > { %1287 = vmatprep.mubr.msk.bf16.mxu0 %vm1427_vm0, %v1426_v1 }
  0x17   : > { %1282 = vmatmul.mubr.msk.bf16.vlgmr.msra.gmra.mxu1 %vm433_vm1, %v485_v8 }
  0x18   : > { %1293 = vmatprep.mubr.msk.bf16.mxu1 %vm1427_vm0, %v1426_v1 }
  0xd5   : > { %v471_v10 = vpop.f32.mrf.mxu0 }
  0xd6   : > { %v472_v11 = vadd.f32 %v1219_v9, %v471_v10 }
  0xd7   : > { %v543_v12 = vpop.f32.mrf.mxu1  ;;  %v1275_v13 = vpop.f32.mrf.mxu0 }
  0xd8   : > { %v477_v14 = vpack.c.bf16 %v472_v11, %v472_v11  ;;  %v544_v21 = vadd.f32 %v1223_v20, %v543_v12 }
  0xd9   : > { %v1283_v15 = vpop.f32.mrf.mxu1  ;;  %v474_v16 = vpop.f32.mrf.mxu0 }
  0xda   : > { %479 = vst.msk [vmem:[#allocation2] sm:$0xf] %vm478_vm2, %v477_v14  ;;  %v562_v25 = vpack.c.bf16 %v544_v21, %v544_v21 }
  0xdb   : > { %v546_v17 = vpop.f32.mrf.mxu1  ;;  %v1276_v18 = vpop.f32.mrf.mxu0 }
  0xdd   : > { %v1284_v19 = vpop.f32.mrf.mxu1 }
  0xe1   : > { %v549_v22 = vld [vmem:[#allocation2] sm:$0xf] }
  0xe2   : > { %v568_v23 = vsel %vm563_vm3, %v549_v22, 0  ;;  %v1560_v24 = vcombine.low %v549_v22, %v549_v22 }
  0xe3   : > { %1286 = vmatpush3.bf16.xpose.msra.mxu0 %v568_v23 }
  0xe4   : > { %791 = vrot.lane.b32.xlu1 %v1560_v24, %s1428_s19  ;;  %679 = vrot.lane.b32.xlu0 %v1560_v24, %s1429_s20 }
  0xe5   : > { %1297 = vmatprep.subr.bf16.mxu0 %v1426_v1 }
  0xe8   : > { %789 = vrot.lane.b32.xlu1 %v562_v25, %s1428_s19  ;;  %677 = vrot.lane.b32.xlu0 %v562_v25, %s1429_s20 }
  0xea   : > { %1288 = vmatmul.mubr.msk.bf16.vlgmr.msra.gmra.mxu0 %vm563_vm3, %v562_v25 }
  0xeb   : > { %1299 = vmatprep.mubr.msk.bf16.mxu0 %vm1427_vm0, %v1426_v1 }
  0xec   : > { %901 = vrot.lane.b32.xlu1 %v562_v25, %s1430_s21  ;;  %903 = vrot.lane.b32.xlu0 %v1560_v24, %s1430_s21 }
  0xf0   : > { %625 = vrot.lane.b32.xlu1 %v1560_v24, %s1431_s22 }
 0x156   : > { %v792_v26 = vpop.permute.xlu1 %791  ;;  %v680_v27 = vpop.permute.xlu0 %679 }
 0x157   : > { %v685_v28 = vsel %vm563_vm3, %v680_v27, 0  ;;  %v797_v32 = vsel %vm563_vm3, %v792_v26, 0 }
 0x158   : > { %1298 = vmatpush3.bf16.xpose.msra.mxu0 %v685_v28 }
 0x159   : > { %1309 = vmatprep.subr.bf16.mxu0 %v1426_v1 }
 0x15a   : > { %v790_v29 = vpop.permute.xlu1 %789  ;;  %v678_v30 = vpop.permute.xlu0 %677 }
 0x15e   : > { %v902_v31 = vpop.permute.xlu1 %901  ;;  %v904_v35 = vpop.permute.xlu0 %903 }
 0x15f   : > { %1300 = vmatmul.mubr.msk.bf16.vlgmr.msra.gmra.mxu0 %vm563_vm3, %v678_v30  ;;  %v909_v36 = vsel %vm563_vm3, %v904_v35, 0 }
 0x160   : > { %1310 = vmatpush3.bf16.xpose.msra.mxu0 %v797_v32  ;;  %1311 = vmatprep.mubr.msk.bf16.mxu0 %vm1427_vm0, %v1426_v1 }
 0x161   : > { %1321 = vmatprep.subr.bf16.mxu0 %v1426_v1 }
 0x162   : > { %v626_v33 = vpop.permute.xlu1 %625 }
 0x163   : > { %v632_v34 = vsel %vm630_vm4, %v626_v33, 0 }
 0x164   : > { %1292 = vmatpush3.bf16.msra.mxu1 %v632_v34 }
 0x165   : > { %1303 = vmatprep.subr.bf16.mxu1 %v1426_v1 }
 0x167   : > { %1312 = vmatmul.mubr.msk.bf16.vlgmr.msra.gmra.mxu0 %vm563_vm3, %v790_v29 }
 0x168   : > { %1322 = vmatpush3.bf16.xpose.msra.mxu0 %v909_v36  ;;  %1323 = vmatprep.mubr.msk.bf16.mxu0 %vm1427_vm0, %v1426_v1 }
 0x169   : > { %1333 = vmatprep.subr.bf16.mxu0 %v1426_v1 }
 0x16f   : > { %1324 = vmatmul.mubr.msk.bf16.vlgmr.msra.gmra.mxu0 %vm563_vm3, %v902_v31 }
 0x170   : > { %1337 = vmatprep.mubr.msk.bf16.mxu0 %vm1427_vm0, %v1426_v1 }
 0x1aa   : > { %v604_v40 = vpop.f32.mrf.mxu0 }
 0x1ab   : > { %v610_v41 = vmul.f32 0.35355338, %v604_v40 }
 0x1ac   : > { %v1289_v42 = vpop.f32.mrf.mxu0 }
 0x1ad   : > { %v611_v43 = vsel %vm561_vm5, %v610_v41, -1e+30  ;;  %v1382_v42 = vld [vmem:[%s1658_s6 + $0x8] sm:$0xff]  }
 0x1ae   : > { %v607_v44 = vpop.f32.mrf.mxu0  ;;  %v612_v45 = vsel %vm563_vm3, %v611_v43, -inf  ;;  %1334 = vmatpush3.bf16.msra.mxu0 %v1382_v42 }
 0x1af   : > { %613 = vmax.xlane.f32.xlu0 %v612_v45  ;;  %1335 = vmatprep.subr.bf16.mxu0 %v1426_v1 }
 0x1b0   : > { %v1290_v46 = vpop.f32.mrf.mxu0 }
 0x21f   : > { %v721_v47 = vpop.f32.mrf.mxu0 }
 0x220   : > { %v727_v48 = vmul.f32 0.35355338, %v721_v47 }
 0x221   : > { %v1301_v49 = vpop.f32.mrf.mxu0 }
 0x222   : > { %v728_v50 = vsel %vm561_vm5, %v727_v48, -1e+30  ;;  %v1383_v49 = vld [vmem:[%s1658_s6] sm:$0xff]  }
 0x223   : > { %v724_v51 = vpop.f32.mrf.mxu0  ;;  %v729_v52 = vsel %vm563_vm3, %v728_v50, -inf  ;;  %1336 = vmatpush3.bf16.msra.mxu0 %v1383_v49 }
 0x224   : > { %730 = vmax.xlane.f32.xlu1 %v729_v52 }
 0x225   : > { %v1302_v53 = vpop.f32.mrf.mxu0 }
 0x227   : > { %v833_v54 = vpop.f32.mrf.mxu0 }
 0x228   : > { %v839_v55 = vmul.f32 0.35355338, %v833_v54 }
 0x229   : > { %v1313_v56 = vpop.f32.mrf.mxu0 }
 0x22a   : > { %v840_v57 = vsel %vm561_vm5, %v839_v55, -1e+30 }
 0x22b   : > { %v836_v58 = vpop.f32.mrf.mxu0  ;;  %v841_v59 = vsel %vm563_vm3, %v840_v57, -inf }
 0x22c   : > { %842 = vmax.xlane.f32.xlu0 %v841_v59 }
 0x22d   : > { %v1314_v60 = vpop.f32.mrf.mxu0 }
 0x22f   : > { %v945_v61 = vpop.f32.mrf.mxu0 }
 0x230   : > { %v951_v62 = vmul.f32 0.35355338, %v945_v61 }
 0x231   : > { %v1325_v63 = vpop.f32.mrf.mxu0 }
 0x232   : > { %v952_v0 = vsel %vm561_vm5, %v951_v62, -1e+30 }
 0x233   : > { %v948_v2 = vpop.f32.mrf.mxu0  ;;  %v953_v3 = vsel %vm563_vm3, %v952_v0, -inf }
 0x234   : > { %954 = vmax.xlane.f32.xlu0 %v953_v3 }
 0x235   : > { %851 = vrot.lane.b32.xlu1 %v1560_v24, %s1432_s23  ;;  %v1326_v4 = vpop.f32.mrf.mxu0 }
 0x238   : > { %v614_v5 = vpop.xlane.xlu0 %613 }
 0x239   : > { %v615_v6 = vsub.f32 %v611_v43, %v614_v5  ;;  %963 = vrot.lane.b32.xlu1 %v1560_v24, %s1433_s24 }
 0x23b   : > { %v616_v8 = vmul.f32 1.442695, %v615_v6 }
 0x23d   : > { %1384 = vpow2.f32 %v616_v8 }
 0x24a   : > { %v1385_v9 = vpop.eup %1384  ;;  %739 = vrot.lane.b32.xlu0 %v1560_v24, %s1434_s26  ;;  %s402_s26 = scalar_lea.vmem %s1662_s10, %s1530_s25 }
 0x24b   : > { %v621_v10 = vpack.c.bf16 %v1385_v9, %v1385_v9  ;;  %v618_v34 = vsel %vm563_vm3, %v1385_v9, 0.0 }
 0x24d   : > { %1294 = vmatmul.mubr.msk.bf16.vlgmr.msra.gmra.mxu1 %vm563_vm3, %v621_v10  ;;  %v1236_v10 = vld [vmem:[%s1659_s7] ss:$0 sm:$0xff] }
 0x24e   : > { %1305 = vmatprep.mubr.msk.bf16.mxu1 %vm1427_vm0, %v1426_v1 }
 0x2ad   : > { %v731_v11 = vpop.xlane.xlu1 %730 }
 0x2ae   : > { %v732_v12 = vsub.f32 %v728_v50, %v731_v11 }
 0x2b0   : > { %v733_v13 = vmul.f32 1.442695, %v732_v12 }
 0x2b1   : > { %v852_v24 = vpop.permute.xlu1 %851 }
 0x2b2   : > { %1386 = vpow2.f32 %v733_v13  ;;  %v857_v26 = vsel %vm630_vm4, %v852_v24, 0 }
 0x2b5   : > { %v843_v14 = vpop.xlane.xlu0 %842  ;;  %v964_v29 = vpop.permute.xlu1 %963 }
 0x2b6   : > { %v844_v15 = vsub.f32 %v840_v57, %v843_v14  ;;  %v969_v31 = vsel %vm630_vm4, %v964_v29, 0 }
 0x2b8   : > { %v845_v16 = vmul.f32 1.442695, %v844_v15 }
 0x2ba   : > { %1388 = vpow2.f32 %v845_v16 }
 0x2bd   : > { %v955_v17 = vpop.xlane.xlu0 %954 }
 0x2be   : > { %v956_v18 = vsub.f32 %v952_v0, %v955_v17 }
 0x2bf   : > { %v1387_v19 = vpop.eup %1386 }
 0x2c0   : > { %v957_v20 = vmul.f32 1.442695, %v956_v18  ;;  %v735_v21 = vsel %vm563_vm3, %v1387_v19, 0.0  ;;  %v738_v25 = vpack.c.bf16 %v1387_v19, %v1387_v19 }
 0x2c1   : > { %736 = vadd.xlane.f32.xlu0 %v735_v21  ;;  %v740_v22 = vpop.permute.xlu0 %739 }
 0x2c2   : > { %1390 = vpow2.f32 %v957_v20  ;;  %v745_v23 = vsel %vm630_vm4, %v740_v22, 0 }
 0x2c3   : > { %1304 = vmatpush3.bf16.msra.mxu1 %v745_v23 }
 0x2c4   : > { %1315 = vmatprep.subr.bf16.mxu1 %v1426_v1 }
 0x2c6   : > { %1306 = vmatmul.mubr.msk.bf16.vlgmr.msra.gmra.mxu1 %vm563_vm3, %v738_v25 }
 0x2c7   : > { %v1389_v27 = vpop.eup %1388  ;;  %1316 = vmatpush3.bf16.msra.mxu1 %v857_v26  ;;  %1317 = vmatprep.mubr.msk.bf16.mxu1 %vm1427_vm0, %v1426_v1 }
 0x2c8   : > { %v847_v28 = vsel %vm563_vm3, %v1389_v27, 0.0  ;;  %1327 = vmatprep.subr.bf16.mxu1 %v1426_v1  ;;  %v850_v30 = vpack.c.bf16 %v1389_v27, %v1389_v27 }
 0x2c9   : > { %848 = vadd.xlane.f32.xlu1 %v847_v28  ;;  %v1241_v28 = vld [vmem:[%s1661_s9] ss:$0 sm:$0xff] }
 0x2ce   : > { %1318 = vmatmul.mubr.msk.bf16.vlgmr.msra.gmra.mxu1 %vm563_vm3, %v850_v30 }
 0x2cf   : > { %v1391_v32 = vpop.eup %1390  ;;  %1328 = vmatpush3.bf16.msra.mxu1 %v969_v31  ;;  %1329 = vmatprep.mubr.msk.bf16.mxu1 %vm1427_vm0, %v1426_v1 }
 0x2d0   : > { %v959_v33 = vsel %vm563_vm3, %v1391_v32, 0.0  ;;  %v962_v35 = vpack.c.bf16 %v1391_v32, %v1391_v32 }
 0x2d1   : > { %960 = vadd.xlane.f32.xlu0 %v959_v33 }
 0x2d5   : > { %619 = vadd.xlane.f32.xlu0 %v618_v34 }
 0x2d6   : > { %1330 = vmatmul.mubr.msk.bf16.vlgmr.msra.gmra.mxu1 %vm563_vm3, %v962_v35 }
 0x30d   : > { %v668_v36 = vpop.f32.mrf.mxu1 }
 0x30f   : > { %v1295_v37 = vpop.f32.mrf.mxu1 }
 0x311   : > { %v671_v38 = vpop.f32.mrf.mxu1 }
 0x313   : > { %v1296_v39 = vpop.f32.mrf.mxu1 }
 0x34a   : > { %v737_v40 = vpop.xlane.xlu0 %736 }
 0x34b   : > { %1392 = vrcp.f32 %v737_v40 }
 0x352   : > { %v849_v41 = vpop.xlane.xlu1 %848 }
 0x353   : > { %1394 = vrcp.f32 %v849_v41 }
 0x358   : > { %v1393_v43 = vpop.eup %1392 }
 0x35a   : > { %v961_v44 = vpop.xlane.xlu0 %960 }
 0x35b   : > { %1396 = vrcp.f32 %v961_v44 }
 0x35e   : > { %v620_v62 = vpop.xlane.xlu0 %619 }
 0x35f   : > { %1398 = vrcp.f32 %v620_v62 }
 0x360   : > { %v1395_v51 = vpop.eup %1394 }
 0x368   : > { %v1397_v1 = vpop.eup %1396 }
 0x36c   : > { %v1399_v63 = vpop.eup %1398 }
 0x36d   : > { %v675_v2 = vmul.f32 %v1399_v63, %v668_v36 }
 0x386   : > { %v781_v45 = vpop.f32.mrf.mxu1 }
 0x387   : > { %v788_v46 = vmul.f32 %v1393_v43, %v781_v45 }
 0x388   : > { %v1307_v47 = vpop.f32.mrf.mxu1 }
 0x389   : > { %1014 = vrot.lane.b32.xlu1 %v788_v46, %s1435_s29 }
 0x38a   : > { %v784_v48 = vpop.f32.mrf.mxu1 }
 0x38c   : > { %v1308_v50 = vpop.f32.mrf.mxu1 }
 0x38e   : > { %v893_v52 = vpop.f32.mrf.mxu1 }
 0x38f   : > { %v900_v53 = vmul.f32 %v1395_v51, %v893_v52 }
 0x390   : > { %v1319_v54 = vpop.f32.mrf.mxu1 }
 0x391   : > { %1018 = vrot.lane.b32.xlu0 %v900_v53, %s1436_s12 }
 0x392   : > { %v896_v55 = vpop.f32.mrf.mxu1 }
 0x394   : > { %v1320_v56 = vpop.f32.mrf.mxu1 }
 0x396   : > { %v1005_v57 = vpop.f32.mrf.mxu1 }
 0x397   : > { %v1012_v58 = vmul.f32 %v1397_v1, %v1005_v57 }
 0x398   : > { %v1331_v59 = vpop.f32.mrf.mxu1 }
 0x399   : > { %1022 = vrot.lane.b32.xlu1 %v1012_v58, %s1437_s13 }
 0x39a   : > { %v1008_v60 = vpop.f32.mrf.mxu1 }
 0x39c   : > { %v1332_v61 = vpop.f32.mrf.mxu1 }
 0x3fb   : > { %v1015_v0 = vpop.permute.xlu1 %1014 }
 0x3fc   : > { %v1025_v4 = vsel %vm563_vm3, %v675_v2, %v1015_v0 }
 0x403   : > { %v1019_v3 = vpop.permute.xlu0 %1018 }
 0x404   : > { %v1027_v5 = vsel %vm1026_vm6, %v1025_v4, %v1019_v3 }
 0x40b   : > { %v1023_v6 = vpop.permute.xlu1 %1022 }
 0x40c   : > { %v1029_v8 = vsel %vm1028_vm7, %v1027_v5, %v1023_v6 }
 0x40d   : > { %v1030_v9 = vpack.c.bf16 %v1029_v8, %v1029_v8 }
 0x40f   : > { %1338 = vmatmul.mubr.msk.bf16.vlgmr.msra.gmra.mxu0 %vm433_vm1, %v1030_v9 }
 0x4cf   : > { %v1087_v11 = vpop.f32.mrf.mxu0 }
 0x4d0   : > { %v1088_v12 = vadd.f32 %v1236_v10, %v1087_v11 }
 0x4d1   : > { %v1339_v13 = vpop.f32.mrf.mxu0 }
 0x4d2   : > { %v1095_v14 = vadd.f32 %v1088_v12, %v1542_v7  ;;  %v1240_v7 = vld [vmem:[%s1660_s8] ss:$0 sm:$0xff] }
 0x4d3   : > { %v1090_v15 = vpop.f32.mrf.mxu0 }
 0x4d4   : > { %v1096_v16 = vsel %vm433_vm1, %v1095_v14, 0.0 }
 0x4d5   : > { %1097 = vadd.xlane.f32.xlu1 %v1096_v16  ;;  %v1340_v17 = vpop.f32.mrf.mxu0 }
 0x55e   : > { %v1098_v18 = vpop.xlane.xlu1 %1097 }
 0x55f   : > { %v1100_v19 = vmul.f32 0.03125, %v1098_v18 }
 0x561   : > { %v1101_v20 = vsub.f32 %v1095_v14, %v1100_v19 }
 0x563   : > { %v1102_v21 = vmul.f32 %v1101_v20, %v1101_v20 }
 0x565   : > { %v1103_v22 = vsel %vm433_vm1, %v1102_v21, 0.0 }
 0x566   : > { %1104 = vadd.xlane.f32.xlu0 %v1103_v22 }
 0x5ef   : > { %v1105_v23 = vpop.xlane.xlu0 %1104 }
 0x5f0   : > { %v1106_v24 = vmul.f32 0.03125, %v1105_v23 }
 0x5f2   : > { %v1107_v25 = vadd.f32 1e-05, %v1106_v24 }
 0x5f4   : > { %1400 = vrsqrt.f32 %v1107_v25 }
 0x601   : > { %v1401_v26 = vpop.eup %1400 }
 0x602   : > { %v1109_v27 = vmul.f32 %v1401_v26, %v1101_v20 }
 0x604   : > { %v1116_v29 = vmul.f32 %v1240_v7, %v1109_v27 }
 0x606   : > { %v1123_v30 = vadd.f32 %v1241_v28, %v1116_v29 }
 0x608   : > { %1124 = vst.msk [vmem:[%s402_s26] sm:$0xff] %vm433_vm1, %v1123_v30 }
 0x609 PF: > { %s20_s15 = sadd.s32 1, %s1424_s15   ;;  %s1663_s13 = smov %s1420_s14 }
 0x60a   : > { %p17_p5 = scmp.ge.s32.totalorder %s20_s15, 4   ;;  %s1664_s14 = smov %s1666_s16 }
 0x60c   :  { %19 = sbr.rel (!%p17_p5) target bundleno = 2 (0x2), region = 97 }

// kernel: harmonia_forward.7
= control target key start
LH: loop header
LB: loop body
LE: loop exit
PB: predicated region body
PF: predicated region fallthrough
CT: control target
= control target key end

     0   :  { %s1427_s27 = smov 0   ;;  %s1429_s28 = smov 0   ;;  %s1581_s0 = inlined_call_operand.vmem [shape: f32[2,8,32], index: 0, kind: input, shape index: {}, may-alias: {0,1}]   ;;  %s1582_s1 = inlined_call_operand.vmem [shape: f32[2,8,32], index: 1, kind: input, shape index: {}, may-alias: {0,1}]   ;;  %s1583_s2 = inlined_call_operand.vmem [shape: bf16[32,96], index: 2, kind: input, shape index: {}]   ;;  %s1584_s3 = inlined_call_operand.vmem [shape: f32[1,96], index: 3, kind: input, shape index: {}]   ;;  %s1585_s4 = inlined_call_operand.vmem [shape: bf16[32,32], index: 4, kind: input, shape index: {}]   ;;  %s1586_s5 = inlined_call_operand.vmem [shape: f32[1,32], index: 5, kind: input, shape index: {}]   ;;  %s1587_s6 = inlined_call_operand.vmem [shape: f32[1,32], index: 6, kind: input, shape index: {}]   ;;  %s1588_s7 = inlined_call_operand.vmem [shape: f32[1,32], index: 7, kind: input, shape index: {}]   ;;  %s1589_s8 = inlined_call_operand.vmem [shape: f32[2,8,32], index: 8, kind: output, shape index: {}]  }
   0x1   :  { %s1431_s29 = smov 0  }
   0x2 LB: > { %s30_s30 = sadd.s32 1, %s1364_s28  ;;  %p1162_p0 = scmp.ge.s32.totalorder %s1368_s29, 1  ;;  %s1368_s29 = sphi %s1431_s29, %s18_s29   ;;  %s1364_s28 = sphi %s1429_s28, %s1591_s28   ;;  %s1360_s27 = sphi %s1427_s27, %s1590_s27  }
   0x3   : > { %p32_p1 = scmp.ge.s32.totalorder %s30_s30, 2  ;;  %p289_p2 = scmp.lt.s32.totalorder %s1368_s29, 3 }
   0x5   : > { %s1593_s30 = smov (%p32_p1, %s30_s30), 0  ;;  %p290_p3 = pnand %p1162_p0, %p289_p2 }
   0x6   : > { %s1370_s11 = smov (!%p290_p3), 96   ;;  %p331_p4 = scmp.lt.s32.totalorder (!%p290_p3), %s1360_s27, 1 }
   0x7   : > { %293 = sbr.rel (%p290_p3) target bundleno = 1659 (0x67b), region = 52  ;;  %s1373_s23 = smov (!%p290_p3), 120  }
   0x8   : > { %s1374_s24 = smov (!%p290_p3), 112   ;;  %s1375_s25 = smov (!%p290_p3), 104  }
   0x9   : > { %s1376_s26 = smov (!%p290_p3), 88   ;;  %s1378_s9 = smov (!%p290_p3), 72  }
   0xa   : > { %s1379_s12 = smov (!%p290_p3), 8   ;;  %s1380_s15 = smov (!%p290_p3), 16  }
   0xb   : > { %s1381_s17 = smov (!%p290_p3), 24  }
   0xc   : > { %v1323_v0 = vld [vmem:[%s1583_s2 + $0x8] sm:$0xff]   ;;  %v1324_v1 = vld [vmem:[%s1583_s2] sm:$0xff]   ;;  %v1371_v2 = vmov 0.0   ;;  %vm1372_vm0 = vmmov 0   ;;  %s1595_s27 = smov (!%p331_p4, %s1360_s27), 1  ;;  %vm385_vm1 = vcmask 261120   ;;  %v362_v35 = vlaneseq }
   0xd   : > { %378 = vrot.lane.b32.xlu0 %v1323_v0, %s1370_s11  ;;  %1215 = vmatprep.subr.bf16.mxu0 %v1371_v2  ;;  %v1189_v3 = vld [vmem:[%s1584_s3] ss:$0 sm:$0xff]  ;;  %s1464_s16 = sshll.u32 %s1595_s27, 3  ;;  %vm430_vm2 = vcmask 519168   ;;  %vm510_vm3 = vcmask 64512   ;;  %s1377_s27 = smov 80  }
   0xe   : > { %1219 = vmatprep.mubr.msk.bf16.mxu0 %vm1372_vm0, %v1371_v2  ;;  %1223 = vmatprep.subr.bf16.mxu1 %v1371_v2  ;;  %s341_s19 = scalar_lea.vmem %s1582_s1, %s1464_s16  ;;  %s334_s22 = scalar_lea.vmem %s1581_s0, %s1464_s16  ;;  %v363_v36 = vshrl.u32 %v362_v35, 7  ;;  %v507_v37 = vand.u32 127, %v362_v35  ;;  %vm577_vm5 = vcmask 1043456   ;;  %vm973_vm6 = vcmask 130048  }
   0xf   : > { %1224 = vmatpush3.bf16.msra.mxu1 %v1323_v0  ;;  %1227 = vmatprep.mubr.msk.bf16.mxu1 %vm1372_vm0, %v1371_v2  ;;  %v1470_v4 = vld [vmem:[%s341_s19] sm:$0xff]  ;;  %vm975_vm7 = vcmask 195584  }
  0x10   : > { %1225 = vmatprep.subr.bf16.mxu1 %v1371_v2  ;;  %382 = vrot.lane.b32.xlu1 %v1189_v3, %s1370_s11  ;;  %v433_v5 = vpack.c.bf16 %v1470_v4, %v1470_v4  ;;  %v359_v7 = vld [vmem:[%s334_s22] sm:$0xff]  ;;  %vm508_vm4 = vcmp.ge.s32.totalorder %v363_v36, %v507_v37 }
  0x11   : > { %376 = vrot.lane.b32.xlu0 %v1324_v1, %s1370_s11  ;;  %v360_v9 = vpack.c.bf16 %v359_v7, %v359_v7 }
  0x13   : > { %1226 = vmatpush3.bf16.msra.mxu1 %v1324_v1 }
  0x14   : > { %1237 = vmatprep.subr.bf16.mxu1 %v1371_v2 }
  0x16   : > { %1228 = vmatmul.mubr.msk.bf16.vlgmr.msra.gmra.mxu1 %vm385_vm1, %v433_v5 }
  0x17   : > { %1239 = vmatprep.mubr.msk.bf16.mxu1 %vm1372_vm0, %v1371_v2 }
  0x7f   : > { %v379_v6 = vpop.permute.xlu0 %378 }
  0x80   : > { %1216 = vmatpush3.bf16.msra.mxu0 %v379_v6 }
  0x81   : > { %1217 = vmatprep.subr.bf16.mxu0 %v1371_v2 }
  0x82   : > { %v383_v16 = vpop.permute.xlu1 %382 }
  0x83   : > { %v377_v8 = vpop.permute.xlu0 %376 }
  0x84   : > { %1218 = vmatpush3.bf16.msra.mxu0 %v377_v8 }
  0x85   : > { %1231 = vmatprep.subr.bf16.mxu0 %v1371_v2 }
  0x87   : > { %1220 = vmatmul.mubr.msk.bf16.vlgmr.msra.gmra.mxu0 %vm385_vm1, %v360_v9 }
  0x88   : > { %1233 = vmatprep.mubr.msk.bf16.mxu0 %vm1372_vm0, %v1371_v2 }
  0xd6   : > { %v490_v10 = vpop.f32.mrf.mxu1 }
  0xd7   : > { %v491_v11 = vadd.f32 %v1189_v3, %v490_v10 }
  0xd8   : > { %v1229_v12 = vpop.f32.mrf.mxu1 }
  0xd9   : > { %v509_v13 = vpack.c.bf16 %v491_v11, %v491_v11 }
  0xda   : > { %v493_v14 = vpop.f32.mrf.mxu1 }
  0xdb   : > { %624 = vrot.lane.b32.xlu0 %v509_v13, %s1373_s23 }
  0xdc   : > { %v1230_v15 = vpop.f32.mrf.mxu1 }
  0xdf   : > { %736 = vrot.lane.b32.xlu0 %v509_v13, %s1374_s24 }
  0xe3   : > { %848 = vrot.lane.b32.xlu0 %v509_v13, %s1375_s25 }
 0x147   : > { %v423_v17 = vpop.f32.mrf.mxu0 }
 0x148   : > { %v424_v18 = vadd.f32 %v423_v17, %v383_v16 }
 0x149   : > { %v1221_v19 = vpop.f32.mrf.mxu0 }
 0x14a   : > { %v429_v20 = vpack.c.bf16 %v424_v18, %v424_v18 }
 0x14b   : > { %v426_v21 = vpop.f32.mrf.mxu0 }
 0x14c   : > { %431 = vst.msk [vmem:[#allocation2] sm:$0xf] %vm430_vm2, %v429_v20 }
 0x14d   : > { %v1222_v22 = vpop.f32.mrf.mxu0  ;;  %v625_v29 = vpop.permute.xlu0 %624 }
 0x151   : > { %v737_v32 = vpop.permute.xlu0 %736 }
 0x153   : > { %v496_v23 = vld [vmem:[#allocation2] sm:$0xf] }
 0x154   : > { %v515_v24 = vsel %vm510_vm3, %v496_v23, 0  ;;  %v1488_v25 = vcombine.low %v496_v23, %v496_v23 }
 0x155   : > { %1232 = vmatpush3.bf16.xpose.msra.mxu0 %v515_v24  ;;  %v849_v34 = vpop.permute.xlu0 %848 }
 0x156   : > { %626 = vrot.lane.b32.xlu1 %v1488_v25, %s1373_s23  ;;  %1243 = vmatprep.subr.bf16.mxu0 %v1371_v2 }
 0x15a   : > { %738 = vrot.lane.b32.xlu1 %v1488_v25, %s1374_s24 }
 0x15c   : > { %1234 = vmatmul.mubr.msk.bf16.vlgmr.msra.gmra.mxu0 %vm510_vm3, %v509_v13 }
 0x15d   : > { %1245 = vmatprep.mubr.msk.bf16.mxu0 %vm1372_vm0, %v1371_v2 }
 0x15e   : > { %850 = vrot.lane.b32.xlu1 %v1488_v25, %s1375_s25 }
 0x1c8   : > { %v627_v26 = vpop.permute.xlu1 %626 }
 0x1c9   : > { %v632_v27 = vsel %vm510_vm3, %v627_v26, 0 }
 0x1ca   : > { %1244 = vmatpush3.bf16.xpose.msra.mxu0 %v632_v27 }
 0x1cb   : > { %1255 = vmatprep.subr.bf16.mxu0 %v1371_v2 }
 0x1cc   : > { %v739_v28 = vpop.permute.xlu1 %738 }
 0x1cd   : > { %v744_v30 = vsel %vm510_vm3, %v739_v28, 0 }
 0x1d0   : > { %v851_v31 = vpop.permute.xlu1 %850 }
 0x1d1   : > { %1246 = vmatmul.mubr.msk.bf16.vlgmr.msra.gmra.mxu0 %vm510_vm3, %v625_v29  ;;  %v856_v33 = vsel %vm510_vm3, %v851_v31, 0 }
 0x1d2   : > { %1256 = vmatpush3.bf16.xpose.msra.mxu0 %v744_v30  ;;  %1257 = vmatprep.mubr.msk.bf16.mxu0 %vm1372_vm0, %v1371_v2 }
 0x1d3   : > { %1267 = vmatprep.subr.bf16.mxu0 %v1371_v2 }
 0x1d9   : > { %1258 = vmatmul.mubr.msk.bf16.vlgmr.msra.gmra.mxu0 %vm510_vm3, %v737_v32 }
 0x1da   : > { %1268 = vmatpush3.bf16.xpose.msra.mxu0 %v856_v33  ;;  %1269 = vmatprep.mubr.msk.bf16.mxu0 %vm1372_vm0, %v1371_v2 }
 0x1db   : > { %1279 = vmatprep.subr.bf16.mxu0 %v1371_v2 }
 0x1e1   : > { %1270 = vmatmul.mubr.msk.bf16.vlgmr.msra.gmra.mxu0 %vm510_vm3, %v849_v34 }
 0x1e2   : > { %1283 = vmatprep.mubr.msk.bf16.mxu0 %vm1372_vm0, %v1371_v2 }
 0x21c   : > { %v551_v38 = vpop.f32.mrf.mxu0 }
 0x21d   : > { %v557_v39 = vmul.f32 0.35355338, %v551_v38 }
 0x21e   : > { %v1235_v40 = vpop.f32.mrf.mxu0 }
 0x21f   : > { %v558_v41 = vsel %vm508_vm4, %v557_v39, -1e+30 }
 0x220   : > { %v554_v42 = vpop.f32.mrf.mxu0  ;;  %v559_v43 = vsel %vm510_vm3, %v558_v41, -inf }
 0x221   : > { %560 = vmax.xlane.f32.xlu1 %v559_v43  ;;  %v1326_v42 = vld [vmem:[%s1585_s4 + $0x8] sm:$0xff]  }
 0x222   : > { %v1236_v44 = vpop.f32.mrf.mxu0  ;;  %1280 = vmatpush3.bf16.msra.mxu0 %v1326_v42 }
 0x223   : > { %1281 = vmatprep.subr.bf16.mxu0 %v1371_v2 }
 0x232   : > { %686 = vrot.lane.b32.xlu1 %v1488_v25, %s1376_s26  ;;  %s348_s26 = scalar_lea.vmem %s1589_s8, %s1464_s16 }
 0x291   : > { %v668_v45 = vpop.f32.mrf.mxu0 }
 0x292   : > { %v674_v46 = vmul.f32 0.35355338, %v668_v45 }
 0x293   : > { %v1247_v47 = vpop.f32.mrf.mxu0 }
 0x294   : > { %v675_v48 = vsel %vm508_vm4, %v674_v46, -1e+30 }
 0x295   : > { %v671_v49 = vpop.f32.mrf.mxu0  ;;  %v676_v50 = vsel %vm510_vm3, %v675_v48, -inf }
 0x296   : > { %677 = vmax.xlane.f32.xlu0 %v676_v50  ;;  %v1327_v49 = vld [vmem:[%s1585_s4] sm:$0xff]  }
 0x297   : > { %v1248_v51 = vpop.f32.mrf.mxu0  ;;  %1282 = vmatpush3.bf16.msra.mxu0 %v1327_v49 }
 0x299   : > { %v780_v52 = vpop.f32.mrf.mxu0 }
 0x29a   : > { %v786_v53 = vmul.f32 0.35355338, %v780_v52 }
 0x29b   : > { %v1259_v54 = vpop.f32.mrf.mxu0 }
 0x29c   : > { %v787_v55 = vsel %vm508_vm4, %v786_v53, -1e+30 }
 0x29d   : > { %v783_v56 = vpop.f32.mrf.mxu0  ;;  %v788_v57 = vsel %vm510_vm3, %v787_v55, -inf }
 0x29e   : > { %789 = vmax.xlane.f32.xlu0 %v788_v57 }
 0x29f   : > { %v1260_v58 = vpop.f32.mrf.mxu0 }
 0x2a1   : > { %v892_v59 = vpop.f32.mrf.mxu0 }
 0x2a2   : > { %v898_v60 = vmul.f32 0.35355338, %v892_v59 }
 0x2a3   : > { %v1271_v61 = vpop.f32.mrf.mxu0 }
 0x2a4   : > { %v899_v62 = vsel %vm508_vm4, %v898_v60, -1e+30 }
 0x2a5   : > { %v895_v63 = vpop.f32.mrf.mxu0  ;;  %v900_v0 = vsel %vm510_vm3, %v899_v62, -inf }
 0x2a6   : > { %901 = vmax.xlane.f32.xlu1 %v900_v0 }
 0x2a7   : > { %v1272_v1 = vpop.f32.mrf.mxu0 }
 0x2aa   : > { %v561_v3 = vpop.xlane.xlu1 %560 }
 0x2ab   : > { %v562_v5 = vsub.f32 %v558_v41, %v561_v3 }
 0x2ad   : > { %v563_v6 = vmul.f32 1.442695, %v562_v5 }
 0x2ae   : > { %v687_v14 = vpop.permute.xlu1 %686 }
 0x2af   : > { %1328 = vpow2.f32 %v563_v6  ;;  %v692_v19 = vsel %vm577_vm5, %v687_v14, 0 }
 0x2b4   : > { %572 = vrot.lane.b32.xlu0 %v1488_v25, %s1370_s11 }
 0x2b7   : > { %798 = vrot.lane.b32.xlu1 %v1488_v25, %s1377_s27 }
 0x2b8   : > { %910 = vrot.lane.b32.xlu0 %v1488_v25, %s1378_s9 }
 0x2bc   : > { %v1329_v13 = vpop.eup %1328 }
 0x2bd   : > { %v568_v17 = vpack.c.bf16 %v1329_v13, %v1329_v13  ;;  %v565_v25 = vsel %vm510_vm3, %v1329_v13, 0.0 }
 0x31f   : > { %v678_v7 = vpop.xlane.xlu0 %677 }
 0x320   : > { %v679_v8 = vsub.f32 %v675_v48, %v678_v7 }
 0x322   : > { %v680_v9 = vmul.f32 1.442695, %v679_v8 }
 0x324   : > { %1330 = vpow2.f32 %v680_v9 }
 0x327   : > { %v790_v10 = vpop.xlane.xlu0 %789 }
 0x328   : > { %v791_v11 = vsub.f32 %v787_v55, %v790_v10  ;;  %v1181_v10 = vld [vmem:[%s1586_s5] ss:$0 sm:$0xff] }
 0x32a   : > { %v792_v12 = vmul.f32 1.442695, %v791_v11 }
 0x32b   : > { %v573_v15 = vpop.permute.xlu0 %572 }
 0x32c   : > { %1332 = vpow2.f32 %v792_v12  ;;  %v579_v16 = vsel %vm577_vm5, %v573_v15, 0 }
 0x32d   : > { %1238 = vmatpush3.bf16.msra.mxu1 %v579_v16 }
 0x32e   : > { %1249 = vmatprep.subr.bf16.mxu1 %v1371_v2 }
 0x32f   : > { %v902_v18 = vpop.xlane.xlu1 %901  ;;  %v911_v30 = vpop.permute.xlu0 %910 }
 0x330   : > { %v903_v20 = vsub.f32 %v899_v62, %v902_v18  ;;  %1240 = vmatmul.mubr.msk.bf16.vlgmr.msra.gmra.mxu1 %vm510_vm3, %v568_v17  ;;  %v916_v32 = vsel %vm577_vm5, %v911_v30, 0 }
 0x331   : > { %v1331_v21 = vpop.eup %1330  ;;  %1250 = vmatpush3.bf16.msra.mxu1 %v692_v19  ;;  %1251 = vmatprep.mubr.msk.bf16.mxu1 %vm1372_vm0, %v1371_v2 }
 0x332   : > { %v904_v22 = vmul.f32 1.442695, %v903_v20  ;;  %v682_v23 = vsel %vm510_vm3, %v1331_v21, 0.0  ;;  %1261 = vmatprep.subr.bf16.mxu1 %v1371_v2  ;;  %v685_v26 = vpack.c.bf16 %v1331_v21, %v1331_v21 }
 0x333   : > { %683 = vadd.xlane.f32.xlu1 %v682_v23  ;;  %v799_v24 = vpop.permute.xlu1 %798 }
 0x334   : > { %1334 = vpow2.f32 %v904_v22  ;;  %v804_v27 = vsel %vm577_vm5, %v799_v24, 0 }
 0x337   : > { %566 = vadd.xlane.f32.xlu1 %v565_v25 }
 0x338   : > { %1252 = vmatmul.mubr.msk.bf16.vlgmr.msra.gmra.mxu1 %vm510_vm3, %v685_v26 }
 0x339   : > { %v1333_v28 = vpop.eup %1332  ;;  %1262 = vmatpush3.bf16.msra.mxu1 %v804_v27  ;;  %1263 = vmatprep.mubr.msk.bf16.mxu1 %vm1372_vm0, %v1371_v2 }
 0x33a   : > { %v794_v29 = vsel %vm510_vm3, %v1333_v28, 0.0  ;;  %1273 = vmatprep.subr.bf16.mxu1 %v1371_v2  ;;  %v797_v31 = vpack.c.bf16 %v1333_v28, %v1333_v28  ;;  %v1186_v28 = vld [vmem:[%s1588_s7] ss:$0 sm:$0xff] }
 0x33b   : > { %795 = vadd.xlane.f32.xlu0 %v794_v29 }
 0x340   : > { %1264 = vmatmul.mubr.msk.bf16.vlgmr.msra.gmra.mxu1 %vm510_vm3, %v797_v31 }
 0x341   : > { %v1335_v33 = vpop.eup %1334  ;;  %1274 = vmatpush3.bf16.msra.mxu1 %v916_v32  ;;  %1275 = vmatprep.mubr.msk.bf16.mxu1 %vm1372_vm0, %v1371_v2 }
 0x342   : > { %v906_v34 = vsel %vm510_vm3, %v1335_v33, 0.0  ;;  %v909_v35 = vpack.c.bf16 %v1335_v33, %v1335_v33 }
 0x343   : > { %907 = vadd.xlane.f32.xlu0 %v906_v34 }
 0x348   : > { %1276 = vmatmul.mubr.msk.bf16.vlgmr.msra.gmra.mxu1 %vm510_vm3, %v909_v35 }
 0x3bc   : > { %v684_v36 = vpop.xlane.xlu1 %683 }
 0x3bd   : > { %1336 = vrcp.f32 %v684_v36 }
 0x3c0   : > { %v567_v62 = vpop.xlane.xlu1 %566 }
 0x3c4   : > { %v796_v37 = vpop.xlane.xlu0 %795 }
 0x3c5   : > { %1338 = vrcp.f32 %v796_v37 }
 0x3ca   : > { %v1337_v43 = vpop.eup %1336 }
 0x3cc   : > { %v908_v44 = vpop.xlane.xlu0 %907 }
 0x3cd   : > { %1340 = vrcp.f32 %v908_v44 }
 0x3ce   : > { %1342 = vrcp.f32 %v567_v62 }
 0x3d2   : > { %v1339_v51 = vpop.eup %1338 }
 0x3da   : > { %v1341_v2 = vpop.eup %1340 }
 0x3db   : > { %v1343_v63 = vpop.eup %1342 }
 0x3f0   : > { %v615_v38 = vpop.f32.mrf.mxu1 }
 0x3f1   : > { %v622_v3 = vmul.f32 %v1343_v63, %v615_v38 }
 0x3f2   : > { %v1241_v39 = vpop.f32.mrf.mxu1 }
 0x3f4   : > { %v618_v40 = vpop.f32.mrf.mxu1 }
 0x3f6   : > { %v1242_v41 = vpop.f32.mrf.mxu1 }
 0x3f8   : > { %v728_v45 = vpop.f32.mrf.mxu1 }
 0x3f9   : > { %v735_v46 = vmul.f32 %v1337_v43, %v728_v45 }
 0x3fa   : > { %v1253_v47 = vpop.f32.mrf.mxu1 }
 0x3fb   : > { %961 = vrot.lane.b32.xlu0 %v735_v46, %s1379_s12 }
 0x3fc   : > { %v731_v48 = vpop.f32.mrf.mxu1 }
 0x3fe   : > { %v1254_v50 = vpop.f32.mrf.mxu1 }
 0x400   : > { %v840_v52 = vpop.f32.mrf.mxu1 }
 0x401   : > { %v847_v53 = vmul.f32 %v1339_v51, %v840_v52 }
 0x402   : > { %v1265_v54 = vpop.f32.mrf.mxu1 }
 0x403   : > { %965 = vrot.lane.b32.xlu1 %v847_v53, %s1380_s15 }
 0x404   : > { %v843_v55 = vpop.f32.mrf.mxu1 }
 0x406   : > { %v1266_v56 = vpop.f32.mrf.mxu1 }
 0x408   : > { %v952_v57 = vpop.f32.mrf.mxu1 }
 0x409   : > { %v959_v58 = vmul.f32 %v1341_v2, %v952_v57 }
 0x40a   : > { %v1277_v59 = vpop.f32.mrf.mxu1 }
 0x40b   : > { %969 = vrot.lane.b32.xlu1 %v959_v58, %s1381_s17 }
 0x40c   : > { %v955_v60 = vpop.f32.mrf.mxu1 }
 0x40e   : > { %v1278_v61 = vpop.f32.mrf.mxu1 }
 0x46d   : > { %v962_v0 = vpop.permute.xlu0 %961 }
 0x46e   : > { %v972_v5 = vsel %vm510_vm3, %v622_v3, %v962_v0 }
 0x475   : > { %v966_v1 = vpop.permute.xlu1 %965 }
 0x476   : > { %v974_v6 = vsel %vm973_vm6, %v972_v5, %v966_v1 }
 0x47d   : > { %v970_v7 = vpop.permute.xlu1 %969 }
 0x47e   : > { %v976_v8 = vsel %vm975_vm7, %v974_v6, %v970_v7 }
 0x47f   : > { %v977_v9 = vpack.c.bf16 %v976_v8, %v976_v8 }
 0x481   : > { %1284 = vmatmul.mubr.msk.bf16.vlgmr.msra.gmra.mxu0 %vm385_vm1, %v977_v9 }
 0x541   : > { %v1034_v11 = vpop.f32.mrf.mxu0 }
 0x542   : > { %v1035_v12 = vadd.f32 %v1181_v10, %v1034_v11 }
 0x543   : > { %v1285_v13 = vpop.f32.mrf.mxu0 }
 0x544   : > { %v1042_v14 = vadd.f32 %v1035_v12, %v1470_v4  ;;  %v1185_v4 = vld [vmem:[%s1587_s6] ss:$0 sm:$0xff] }
 0x545   : > { %v1037_v15 = vpop.f32.mrf.mxu0 }
 0x546   : > { %v1043_v16 = vsel %vm385_vm1, %v1042_v14, 0.0 }
 0x547   : > { %1044 = vadd.xlane.f32.xlu0 %v1043_v16  ;;  %v1286_v17 = vpop.f32.mrf.mxu0 }
 0x5d0   : > { %v1045_v18 = vpop.xlane.xlu0 %1044 }
 0x5d1   : > { %v1047_v19 = vmul.f32 0.03125, %v1045_v18 }
 0x5d3   : > { %v1048_v20 = vsub.f32 %v1042_v14, %v1047_v19 }
 0x5d5   : > { %v1049_v21 = vmul.f32 %v1048_v20, %v1048_v20 }
 0x5d7   : > { %v1050_v22 = vsel %vm385_vm1, %v1049_v21, 0.0 }
 0x5d8   : > { %1051 = vadd.xlane.f32.xlu1 %v1050_v22 }
 0x661   : > { %v1052_v23 = vpop.xlane.xlu1 %1051 }
 0x662   : > { %v1053_v24 = vmul.f32 0.03125, %v1052_v23 }
 0x664   : > { %v1054_v25 = vadd.f32 1e-05, %v1053_v24 }
 0x666   : > { %1344 = vrsqrt.f32 %v1054_v25 }
 0x673   : > { %v1345_v26 = vpop.eup %1344 }
 0x674   : > { %v1056_v27 = vmul.f32 %v1345_v26, %v1048_v20 }
 0x676   : > { %v1063_v29 = vmul.f32 %v1185_v4, %v1056_v27 }
 0x678   : > { %v1070_v30 = vadd.f32 %v1186_v28, %v1063_v29 }
 0x67a   : > { %1071 = vst.msk [vmem:[%s348_s26] sm:$0xff] %vm385_vm1, %v1070_v30 }
 0x67b PF: > { %s18_s29 = sadd.s32 1, %s1368_s29   ;;  %s1590_s27 = smov %s1364_s28 }
 0x67c   : > { %p15_p5 = scmp.ge.s32.totalorder %s18_s29, 4   ;;  %s1591_s28 = smov %s1593_s30 }
 0x67e   :  { %17 = sbr.rel (!%p15_p5) target bundleno = 2 (0x2), region = 89 }

</bundles_post_ra>
